<compile_context>
chip_gen: v7x
topology: tpu7x:2x2x1
jax: 0.10.0
libtpu: 0.0.40
codegen_flags: <defaults>
</compile_context>

<pallas_src>
import functools

import jax
import jax.numpy as jnp
from jax.experimental import pallas as pl
from jax.experimental.pallas import tpu as pltpu


def _round_up(x: int, m: int) -> int:
    return ((x + m - 1) // m) * m


def _vmem_limit_bytes(fraction: float = 0.80) -> int:
    """~80% of this generation's VMEM (51 MiB on v7x, ~102 MiB on v5e/v6e)."""
    cap = 128 * 1024 * 1024  # v5e / v6e physical VMEM per TensorCore (fallback)
    try:
        info = pltpu.get_tpu_info()
        cap_attr = getattr(info, "vmem_capacity_bytes", None)
        if cap_attr:
            cap = int(cap_attr)
    except Exception:
        pass
    return int(cap * fraction)


def _mhsa_kernel(nvalid_ref, z_ref, wqkv_ref, wo_ref, bo_ref, o_ref,
                 q_cache, k_cache, v_cache, ctx_ref, *,
                 head: int, bn: int, maybe_padded: bool, approx_recip: bool):
    # nvalid_ref: (1,)        SMEM, number of valid (unpadded) tokens
    # z_ref     : (n_pad, D)  full (padded) sequence for this batch element
    # wqkv_ref  : (D, 3D)     fused [W_q*scale | W_k | W_v], resident in VMEM
    # wo_ref    : (D, D)      output projection weight, resident in VMEM
    # bo_ref    : (1, D)      output projection bias (f32), resident in VMEM
    # o_ref     : (bn, D)     output tile
    # *_cache   : (head, n_pad, hd)  per-head Q/K/V caches (compute dtype)
    # ctx_ref   : (bn, D)     f32 scratch assembling the per-head PV results
    f32 = jnp.float32
    cdt = z_ref.dtype
    n_pad, D = z_ref.shape
    hd = D // head
    qi = pl.program_id(1)

    # ---- once per batch element: fused QKV projection, cached per head ----
    @pl.when(qi == 0)
    def _project_qkv():
        qkv = jnp.dot(z_ref[...], wqkv_ref[...],
                      preferred_element_type=f32)          # (n_pad, 3D) f32
        for h in range(head):                               # static, small
            lo = h * hd
            q_cache[h] = qkv[:, lo:lo + hd].astype(cdt)
            k_cache[h] = qkv[:, D + lo:D + lo + hd].astype(cdt)
            v_cache[h] = qkv[:, 2 * D + lo:2 * D + lo + hd].astype(cdt)

    n_valid = nvalid_ref[0]
    q_start = qi * bn

    # ---- per query tile ----
    @pl.when(q_start < n_valid)
    def _attend():
        if maybe_padded:
            # (1, n_pad) mask, broadcast over query rows inside jnp.where.
            key_pos = jax.lax.broadcasted_iota(jnp.int32, (1, n_pad), 1)
            key_mask = key_pos < n_valid

        row0 = pl.multiple_of(q_start, bn)
        contract_last = (((1,), (1,)), ((), ()))            # q @ k^T, no .T

        # TODO(synk): for very long sequences, chunk the key axis flash-style
        # (online softmax over 512-1024-key chunks) so the (bn, n_pad) score
        # tile and the KV caches stay bounded on v7x's 64 MiB VMEM.
        for h in range(head):                               # static head loop
            qh = q_cache[h, pl.ds(row0, bn), :]             # (bn, hd) cdt
            kh = k_cache[h]                                 # (n_pad, hd) cdt
            vh = v_cache[h]                                 # (n_pad, hd) cdt

            dots = jax.lax.dot_general(qh, kh, contract_last,
                                       preferred_element_type=f32)  # (bn,n_pad)
            if maybe_padded:
                # -1e30 is safe only because logits stay f32.
                dots = jnp.where(key_mask, dots, jnp.float32(-1e30))
            dots = dots - jnp.max(dots, axis=-1, keepdims=True)
            e = jnp.exp(dots)                               # EUP
            denom = jnp.sum(e, axis=-1, keepdims=True)
            attn = e * pl.reciprocal(denom, approx=approx_recip)  # EUP recip

            # Write this head's PV result at its static column offset
            # (no jnp.concatenate over heads).
            ctx_ref[:, h * hd:(h + 1) * hd] = jnp.dot(
                attn.astype(cdt), vh, preferred_element_type=f32)  # (bn, hd)

        out = jnp.dot(ctx_ref[...].astype(cdt), wo_ref[...],
                      preferred_element_type=f32) + bo_ref[...]
        o_ref[...] = out.astype(o_ref.dtype)

    @pl.when(q_start >= n_valid)
    def _fully_padded_tile():
        o_ref[...] = jnp.zeros_like(o_ref)                  # sliced off anyway


def multi_head_self_attention(z, w_q, w_k, w_v, w_o, b_o, *, head,
                              block_n=512, compute_dtype=jnp.bfloat16):
    """Fused MHSA forward. z: (B, N, D); weights (in, out); b_o: (D,)."""
    B, N, D = z.shape
    assert D % head == 0, "emb_dim must be divisible by head count"
    hd = D // head
    scale = 1.0 / (hd ** 0.5)

    # Token-tile sizing: multiples of 16 sublanes (covers bf16 packing);
    # ragged sequences handled via zero padding + in-kernel key masking.
    bn = min(block_n, _round_up(N, 16))
    bn = _round_up(bn, 16)
    n_pad = _round_up(N, bn)
    n_tiles = n_pad // bn
    maybe_padded = n_pad != N

    z_p = z if not maybe_padded else jnp.pad(z, ((0, 0), (0, n_pad - N), (0, 0)))
    z_c = z_p.astype(compute_dtype)

    # Fused QKV weight with the 1/sqrt(head_dim) scale folded into W_q.
    w_qkv = jnp.concatenate([w_q * jnp.float32(scale), w_k, w_v], axis=1)
    w_qkv_c = w_qkv.astype(compute_dtype)
    w_o_c = w_o.astype(compute_dtype)
    b_o2 = b_o.reshape(1, D).astype(jnp.float32)
    n_valid = jnp.array([N], dtype=jnp.int32)               # scalar prefetch

    approx_recip = jnp.dtype(compute_dtype) != jnp.dtype(jnp.float32)

    kernel = functools.partial(_mhsa_kernel, head=head, bn=bn,
                               maybe_padded=maybe_padded,
                               approx_recip=bool(approx_recip))

    # Whole-array VMEM residency for the constant operands: one copy for the
    # whole kernel, no per-grid-step DMA / double buffering.
    resident = pl.BlockSpec(memory_space=pltpu.MemorySpace.VMEM)

    out = pl.pallas_call(
        kernel,
        out_shape=jax.ShapeDtypeStruct((B, n_pad, D), z.dtype),
        grid_spec=pltpu.PrefetchScalarGridSpec(
            num_scalar_prefetch=1,
            grid=(B, n_tiles),
            in_specs=[
                # full (padded) sequence; re-DMA'd only when b changes
                pl.BlockSpec((None, n_pad, D), lambda b, qi, nv: (b, 0, 0)),
                resident,                                    # W_qkv (D, 3D)
                resident,                                    # W_o   (D, D)
                resident,                                    # b_o   (1, D)
            ],
            out_specs=pl.BlockSpec((None, bn, D), lambda b, qi, nv: (b, qi, 0)),
            scratch_shapes=[
                pltpu.VMEM((head, n_pad, hd), compute_dtype),   # Q cache
                pltpu.VMEM((head, n_pad, hd), compute_dtype),   # K cache
                pltpu.VMEM((head, n_pad, hd), compute_dtype),   # V cache
                pltpu.VMEM((bn, D), jnp.float32),               # ctx assembly
            ],
        ),
        compiler_params=pltpu.CompilerParams(
            # batch axis "parallel" (megacore sharding on v7x); qi axis carries
            # the per-batch QKV cache so it must be "arbitrary".
            dimension_semantics=("parallel", "arbitrary"),
            vmem_limit_bytes=_vmem_limit_bytes(),
        ),
    )(n_valid, z_c, w_qkv_c, w_o_c, b_o2)

    return out[:, :N, :]


def _ref_mhsa(z, w_q, w_k, w_v, w_o, b_o, head):
    B, N, D = z.shape
    hd = D // head
    q = (z @ w_q).reshape(B, N, head, hd).transpose(0, 2, 1, 3)
    k = (z @ w_k).reshape(B, N, head, hd).transpose(0, 2, 1, 3)
    v = (z @ w_v).reshape(B, N, head, hd).transpose(0, 2, 1, 3)
    dots = jnp.einsum("bhqd,bhkd->bhqk", q, k) / jnp.sqrt(jnp.float32(hd))
    attn = jax.nn.softmax(dots, axis=-1)
    out = jnp.einsum("bhqk,bhkd->bhqd", attn, v)
    out = out.transpose(0, 2, 1, 3).reshape(B, N, D)
    return out @ w_o + b_o


if __name__ == "__main__":
    emb_dim, head = 64, 8
    key = jax.random.PRNGKey(0)
    kz1, kz2, kq, kk, kv, ko, kb = jax.random.split(key, 7)

    lim = 1.0 / (emb_dim ** 0.5)
    w_q = jax.random.uniform(kq, (emb_dim, emb_dim), jnp.float32, -lim, lim)
    w_k = jax.random.uniform(kk, (emb_dim, emb_dim), jnp.float32, -lim, lim)
    w_v = jax.random.uniform(kv, (emb_dim, emb_dim), jnp.float32, -lim, lim)
    w_o = jax.random.uniform(ko, (emb_dim, emb_dim), jnp.float32, -lim, lim)
    b_o = jax.random.uniform(kb, (emb_dim,), jnp.float32, -lim, lim)

    cases = [
        jax.random.normal(kz1, (2, 8, emb_dim), jnp.float32),
        jax.random.normal(kz2, (2, 13, emb_dim), jnp.float32),  # ragged seq
    ]

    ok = True
    for z in cases:
        ref = _ref_mhsa(z, w_q, w_k, w_v, w_o, b_o, head)

        # f32 compute path: tight check against the reference.
        out_f32 = multi_head_self_attention(
            z, w_q, w_k, w_v, w_o, b_o, head=head, compute_dtype=jnp.float32)
        out_f32 = jax.block_until_ready(out_f32)
        ok &= bool(jnp.allclose(out_f32, ref, atol=1e-3, rtol=1e-3))

        # bf16 matmul inputs with f32 accumulation (default, MXU-friendly).
        # NOTE: softmax probabilities are cast to bf16 before P@V -> small,
        # documented accuracy delta vs the f32 reference.
        out_bf16 = multi_head_self_attention(
            z, w_q, w_k, w_v, w_o, b_o, head=head)
        out_bf16 = jax.block_until_ready(out_bf16)
        ok &= bool(jnp.allclose(out_bf16, ref, atol=3e-2, rtol=3e-2))

    assert ok, "Pallas MHSA does not match the pure-JAX reference"
    print("KERNEL_OK")
</pallas_src>

<mosaic_0001>
module attributes {stable_mosaic.version = 11 : i64} {
  func.func @_mhsa_kernel(%arg0: i32, %arg1: i32, %arg2: memref<1xi32, #tpu.memory_space<smem>>, %arg3: memref<1x16x64xf32, #tpu.memory_space<vmem>>, %arg4: memref<64x192xf32, #tpu.memory_space<vmem>>, %arg5: memref<64x64xf32, #tpu.memory_space<vmem>>, %arg6: memref<1x64xf32, #tpu.memory_space<vmem>>, %arg7: memref<1x16x64xf32, #tpu.memory_space<vmem>>, %arg8: memref<8x16x8xf32, #tpu.memory_space<vmem>>, %arg9: memref<8x16x8xf32, #tpu.memory_space<vmem>>, %arg10: memref<8x16x8xf32, #tpu.memory_space<vmem>>, %arg11: memref<16x64xf32, #tpu.memory_space<vmem>>) attributes {dimension_semantics = [#tpu.dimension_semantics<parallel>, #tpu.dimension_semantics<arbitrary>], iteration_bounds = array<i64: 2, 1>, scalar_prefetch = 1 : i64, scratch_operands = 4 : i64, tpu.core_type = #tpu.core_type<tc>, window_params = [{transform_indices = @transform_0, window_bounds = array<i64: 1, 16, 64>}, {pipeline_mode = #tpu.pipeline_mode<synchronous>, transform_indices = @transform_1, window_bounds = array<i64: 64, 192>}, {pipeline_mode = #tpu.pipeline_mode<synchronous>, transform_indices = @transform_2, window_bounds = array<i64: 64, 64>}, {pipeline_mode = #tpu.pipeline_mode<synchronous>, transform_indices = @transform_3, window_bounds = array<i64: 1, 64>}, {transform_indices = @transform_4, window_bounds = array<i64: 1, 16, 64>}]} {
    %c0_i32 = arith.constant 0 : i32
    %0 = arith.cmpi eq, %arg1, %c0_i32 : i32
    %1 = arith.extui %0 : i1 to i32
    %c0_i32_0 = arith.constant 0 : i32
    %2 = arith.cmpi ne, %1, %c0_i32_0 : i32
    scf.if %2 {
      %c0_3 = arith.constant 0 : index
      %c0_4 = arith.constant 0 : index
      %c0_5 = arith.constant 0 : index
      %11 = vector.load %arg3[%c0_3, %c0_4, %c0_5] : memref<1x16x64xf32, #tpu.memory_space<vmem>>, vector<1x16x64xf32>
      %12 = vector.shape_cast %11 : vector<1x16x64xf32> to vector<16x64xf32>
      %c0_6 = arith.constant 0 : index
      %c0_7 = arith.constant 0 : index
      %13 = vector.load %arg4[%c0_6, %c0_7] : memref<64x192xf32, #tpu.memory_space<vmem>>, vector<64x192xf32>
      %cst = arith.constant dense<0.000000e+00> : vector<16x192xf32>
      %14 = tpu.matmul %12, %13, %cst {dimension_numbers = #tpu.dot_dimension_numbers<[1], [0], [0], [1], [0, 0, 1, 1], [], []>} : vector<16x64xf32>, vector<64x192xf32>, vector<16x192xf32> -> vector<16x192xf32>
      %15 = vector.extract_strided_slice %14 {offsets = [0, 0], sizes = [16, 8], strides = [1, 1]} : vector<16x192xf32> to vector<16x8xf32>
      %c0_8 = arith.constant 0 : index
      %c0_9 = arith.constant 0 : index
      %c0_10 = arith.constant 0 : index
      %16 = vector.load %arg8[%c0_8, %c0_9, %c0_10] : memref<8x16x8xf32, #tpu.memory_space<vmem>>, vector<1x16x8xf32>
      %17 = vector.shape_cast %16 : vector<1x16x8xf32> to vector<16x8xf32>
      %18 = vector.shape_cast %15 : vector<16x8xf32> to vector<1x16x8xf32>
      tpu.vector_store %arg8[%c0_8, %c0_9, %c0_10], %18 {strides = array<i32>} : memref<8x16x8xf32, #tpu.memory_space<vmem>>, vector<1x16x8xf32>,
      %19 = vector.extract_strided_slice %14 {offsets = [0, 64], sizes = [16, 8], strides = [1, 1]} : vector<16x192xf32> to vector<16x8xf32>
      %c0_11 = arith.constant 0 : index
      %c0_12 = arith.constant 0 : index
      %c0_13 = arith.constant 0 : index
      %20 = vector.load %arg9[%c0_11, %c0_12, %c0_13] : memref<8x16x8xf32, #tpu.memory_space<vmem>>, vector<1x16x8xf32>
      %21 = vector.shape_cast %20 : vector<1x16x8xf32> to vector<16x8xf32>
      %22 = vector.shape_cast %19 : vector<16x8xf32> to vector<1x16x8xf32>
      tpu.vector_store %arg9[%c0_11, %c0_12, %c0_13], %22 {strides = array<i32>} : memref<8x16x8xf32, #tpu.memory_space<vmem>>, vector<1x16x8xf32>,
      %23 = vector.extract_strided_slice %14 {offsets = [0, 128], sizes = [16, 8], strides = [1, 1]} : vector<16x192xf32> to vector<16x8xf32>
      %c0_14 = arith.constant 0 : index
      %c0_15 = arith.constant 0 : index
      %c0_16 = arith.constant 0 : index
      %24 = vector.load %arg10[%c0_14, %c0_15, %c0_16] : memref<8x16x8xf32, #tpu.memory_space<vmem>>, vector<1x16x8xf32>
      %25 = vector.shape_cast %24 : vector<1x16x8xf32> to vector<16x8xf32>
      %26 = vector.shape_cast %23 : vector<16x8xf32> to vector<1x16x8xf32>
      tpu.vector_store %arg10[%c0_14, %c0_15, %c0_16], %26 {strides = array<i32>} : memref<8x16x8xf32, #tpu.memory_space<vmem>>, vector<1x16x8xf32>,
      %27 = vector.extract_strided_slice %14 {offsets = [0, 8], sizes = [16, 8], strides = [1, 1]} : vector<16x192xf32> to vector<16x8xf32>
      %c1 = arith.constant 1 : index
      %c0_17 = arith.constant 0 : index
      %c0_18 = arith.constant 0 : index
      %28 = vector.load %arg8[%c1, %c0_17, %c0_18] : memref<8x16x8xf32, #tpu.memory_space<vmem>>, vector<1x16x8xf32>
      %29 = vector.shape_cast %28 : vector<1x16x8xf32> to vector<16x8xf32>
      %30 = vector.shape_cast %27 : vector<16x8xf32> to vector<1x16x8xf32>
      tpu.vector_store %arg8[%c1, %c0_17, %c0_18], %30 {strides = array<i32>} : memref<8x16x8xf32, #tpu.memory_space<vmem>>, vector<1x16x8xf32>,
      %31 = vector.extract_strided_slice %14 {offsets = [0, 72], sizes = [16, 8], strides = [1, 1]} : vector<16x192xf32> to vector<16x8xf32>
      %c1_19 = arith.constant 1 : index
      %c0_20 = arith.constant 0 : index
      %c0_21 = arith.constant 0 : index
      %32 = vector.load %arg9[%c1_19, %c0_20, %c0_21] : memref<8x16x8xf32, #tpu.memory_space<vmem>>, vector<1x16x8xf32>
      %33 = vector.shape_cast %32 : vector<1x16x8xf32> to vector<16x8xf32>
      %34 = vector.shape_cast %31 : vector<16x8xf32> to vector<1x16x8xf32>
      tpu.vector_store %arg9[%c1_19, %c0_20, %c0_21], %34 {strides = array<i32>} : memref<8x16x8xf32, #tpu.memory_space<vmem>>, vector<1x16x8xf32>,
      %35 = vector.extract_strided_slice %14 {offsets = [0, 136], sizes = [16, 8], strides = [1, 1]} : vector<16x192xf32> to vector<16x8xf32>
      %c1_22 = arith.constant 1 : index
      %c0_23 = arith.constant 0 : index
      %c0_24 = arith.constant 0 : index
      %36 = vector.load %arg10[%c1_22, %c0_23, %c0_24] : memref<8x16x8xf32, #tpu.memory_space<vmem>>, vector<1x16x8xf32>
      %37 = vector.shape_cast %36 : vector<1x16x8xf32> to vector<16x8xf32>
      %38 = vector.shape_cast %35 : vector<16x8xf32> to vector<1x16x8xf32>
      tpu.vector_store %arg10[%c1_22, %c0_23, %c0_24], %38 {strides = array<i32>} : memref<8x16x8xf32, #tpu.memory_space<vmem>>, vector<1x16x8xf32>,
      %39 = vector.extract_strided_slice %14 {offsets = [0, 16], sizes = [16, 8], strides = [1, 1]} : vector<16x192xf32> to vector<16x8xf32>
      %c2 = arith.constant 2 : index
      %c0_25 = arith.constant 0 : index
      %c0_26 = arith.constant 0 : index
      %40 = vector.load %arg8[%c2, %c0_25, %c0_26] : memref<8x16x8xf32, #tpu.memory_space<vmem>>, vector<1x16x8xf32>
      %41 = vector.shape_cast %40 : vector<1x16x8xf32> to vector<16x8xf32>
      %42 = vector.shape_cast %39 : vector<16x8xf32> to vector<1x16x8xf32>
      tpu.vector_store %arg8[%c2, %c0_25, %c0_26], %42 {strides = array<i32>} : memref<8x16x8xf32, #tpu.memory_space<vmem>>, vector<1x16x8xf32>,
      %43 = vector.extract_strided_slice %14 {offsets = [0, 80], sizes = [16, 8], strides = [1, 1]} : vector<16x192xf32> to vector<16x8xf32>
      %c2_27 = arith.constant 2 : index
      %c0_28 = arith.constant 0 : index
      %c0_29 = arith.constant 0 : index
      %44 = vector.load %arg9[%c2_27, %c0_28, %c0_29] : memref<8x16x8xf32, #tpu.memory_space<vmem>>, vector<1x16x8xf32>
      %45 = vector.shape_cast %44 : vector<1x16x8xf32> to vector<16x8xf32>
      %46 = vector.shape_cast %43 : vector<16x8xf32> to vector<1x16x8xf32>
      tpu.vector_store %arg9[%c2_27, %c0_28, %c0_29], %46 {strides = array<i32>} : memref<8x16x8xf32, #tpu.memory_space<vmem>>, vector<1x16x8xf32>,
      %47 = vector.extract_strided_slice %14 {offsets = [0, 144], sizes = [16, 8], strides = [1, 1]} : vector<16x192xf32> to vector<16x8xf32>
      %c2_30 = arith.constant 2 : index
      %c0_31 = arith.constant 0 : index
      %c0_32 = arith.constant 0 : index
      %48 = vector.load %arg10[%c2_30, %c0_31, %c0_32] : memref<8x16x8xf32, #tpu.memory_space<vmem>>, vector<1x16x8xf32>
      %49 = vector.shape_cast %48 : vector<1x16x8xf32> to vector<16x8xf32>
      %50 = vector.shape_cast %47 : vector<16x8xf32> to vector<1x16x8xf32>
      tpu.vector_store %arg10[%c2_30, %c0_31, %c0_32], %50 {strides = array<i32>} : memref<8x16x8xf32, #tpu.memory_space<vmem>>, vector<1x16x8xf32>,
      %51 = vector.extract_strided_slice %14 {offsets = [0, 24], sizes = [16, 8], strides = [1, 1]} : vector<16x192xf32> to vector<16x8xf32>
      %c3 = arith.constant 3 : index
      %c0_33 = arith.constant 0 : index
      %c0_34 = arith.constant 0 : index
      %52 = vector.load %arg8[%c3, %c0_33, %c0_34] : memref<8x16x8xf32, #tpu.memory_space<vmem>>, vector<1x16x8xf32>
      %53 = vector.shape_cast %52 : vector<1x16x8xf32> to vector<16x8xf32>
      %54 = vector.shape_cast %51 : vector<16x8xf32> to vector<1x16x8xf32>
      tpu.vector_store %arg8[%c3, %c0_33, %c0_34], %54 {strides = array<i32>} : memref<8x16x8xf32, #tpu.memory_space<vmem>>, vector<1x16x8xf32>,
      %55 = vector.extract_strided_slice %14 {offsets = [0, 88], sizes = [16, 8], strides = [1, 1]} : vector<16x192xf32> to vector<16x8xf32>
      %c3_35 = arith.constant 3 : index
      %c0_36 = arith.constant 0 : index
      %c0_37 = arith.constant 0 : index
      %56 = vector.load %arg9[%c3_35, %c0_36, %c0_37] : memref<8x16x8xf32, #tpu.memory_space<vmem>>, vector<1x16x8xf32>
      %57 = vector.shape_cast %56 : vector<1x16x8xf32> to vector<16x8xf32>
      %58 = vector.shape_cast %55 : vector<16x8xf32> to vector<1x16x8xf32>
      tpu.vector_store %arg9[%c3_35, %c0_36, %c0_37], %58 {strides = array<i32>} : memref<8x16x8xf32, #tpu.memory_space<vmem>>, vector<1x16x8xf32>,
      %59 = vector.extract_strided_slice %14 {offsets = [0, 152], sizes = [16, 8], strides = [1, 1]} : vector<16x192xf32> to vector<16x8xf32>
      %c3_38 = arith.constant 3 : index
      %c0_39 = arith.constant 0 : index
      %c0_40 = arith.constant 0 : index
      %60 = vector.load %arg10[%c3_38, %c0_39, %c0_40] : memref<8x16x8xf32, #tpu.memory_space<vmem>>, vector<1x16x8xf32>
      %61 = vector.shape_cast %60 : vector<1x16x8xf32> to vector<16x8xf32>
      %62 = vector.shape_cast %59 : vector<16x8xf32> to vector<1x16x8xf32>
      tpu.vector_store %arg10[%c3_38, %c0_39, %c0_40], %62 {strides = array<i32>} : memref<8x16x8xf32, #tpu.memory_space<vmem>>, vector<1x16x8xf32>,
      %63 = vector.extract_strided_slice %14 {offsets = [0, 32], sizes = [16, 8], strides = [1, 1]} : vector<16x192xf32> to vector<16x8xf32>
      %c4 = arith.constant 4 : index
      %c0_41 = arith.constant 0 : index
      %c0_42 = arith.constant 0 : index
      %64 = vector.load %arg8[%c4, %c0_41, %c0_42] : memref<8x16x8xf32, #tpu.memory_space<vmem>>, vector<1x16x8xf32>
      %65 = vector.shape_cast %64 : vector<1x16x8xf32> to vector<16x8xf32>
      %66 = vector.shape_cast %63 : vector<16x8xf32> to vector<1x16x8xf32>
      tpu.vector_store %arg8[%c4, %c0_41, %c0_42], %66 {strides = array<i32>} : memref<8x16x8xf32, #tpu.memory_space<vmem>>, vector<1x16x8xf32>,
      %67 = vector.extract_strided_slice %14 {offsets = [0, 96], sizes = [16, 8], strides = [1, 1]} : vector<16x192xf32> to vector<16x8xf32>
      %c4_43 = arith.constant 4 : index
      %c0_44 = arith.constant 0 : index
      %c0_45 = arith.constant 0 : index
      %68 = vector.load %arg9[%c4_43, %c0_44, %c0_45] : memref<8x16x8xf32, #tpu.memory_space<vmem>>, vector<1x16x8xf32>
      %69 = vector.shape_cast %68 : vector<1x16x8xf32> to vector<16x8xf32>
      %70 = vector.shape_cast %67 : vector<16x8xf32> to vector<1x16x8xf32>
      tpu.vector_store %arg9[%c4_43, %c0_44, %c0_45], %70 {strides = array<i32>} : memref<8x16x8xf32, #tpu.memory_space<vmem>>, vector<1x16x8xf32>,
      %71 = vector.extract_strided_slice %14 {offsets = [0, 160], sizes = [16, 8], strides = [1, 1]} : vector<16x192xf32> to vector<16x8xf32>
      %c4_46 = arith.constant 4 : index
      %c0_47 = arith.constant 0 : index
      %c0_48 = arith.constant 0 : index
      %72 = vector.load %arg10[%c4_46, %c0_47, %c0_48] : memref<8x16x8xf32, #tpu.memory_space<vmem>>, vector<1x16x8xf32>
      %73 = vector.shape_cast %72 : vector<1x16x8xf32> to vector<16x8xf32>
      %74 = vector.shape_cast %71 : vector<16x8xf32> to vector<1x16x8xf32>
      tpu.vector_store %arg10[%c4_46, %c0_47, %c0_48], %74 {strides = array<i32>} : memref<8x16x8xf32, #tpu.memory_space<vmem>>, vector<1x16x8xf32>,
      %75 = vector.extract_strided_slice %14 {offsets = [0, 40], sizes = [16, 8], strides = [1, 1]} : vector<16x192xf32> to vector<16x8xf32>
      %c5 = arith.constant 5 : index
      %c0_49 = arith.constant 0 : index
      %c0_50 = arith.constant 0 : index
      %76 = vector.load %arg8[%c5, %c0_49, %c0_50] : memref<8x16x8xf32, #tpu.memory_space<vmem>>, vector<1x16x8xf32>
      %77 = vector.shape_cast %76 : vector<1x16x8xf32> to vector<16x8xf32>
      %78 = vector.shape_cast %75 : vector<16x8xf32> to vector<1x16x8xf32>
      tpu.vector_store %arg8[%c5, %c0_49, %c0_50], %78 {strides = array<i32>} : memref<8x16x8xf32, #tpu.memory_space<vmem>>, vector<1x16x8xf32>,
      %79 = vector.extract_strided_slice %14 {offsets = [0, 104], sizes = [16, 8], strides = [1, 1]} : vector<16x192xf32> to vector<16x8xf32>
      %c5_51 = arith.constant 5 : index
      %c0_52 = arith.constant 0 : index
      %c0_53 = arith.constant 0 : index
      %80 = vector.load %arg9[%c5_51, %c0_52, %c0_53] : memref<8x16x8xf32, #tpu.memory_space<vmem>>, vector<1x16x8xf32>
      %81 = vector.shape_cast %80 : vector<1x16x8xf32> to vector<16x8xf32>
      %82 = vector.shape_cast %79 : vector<16x8xf32> to vector<1x16x8xf32>
      tpu.vector_store %arg9[%c5_51, %c0_52, %c0_53], %82 {strides = array<i32>} : memref<8x16x8xf32, #tpu.memory_space<vmem>>, vector<1x16x8xf32>,
      %83 = vector.extract_strided_slice %14 {offsets = [0, 168], sizes = [16, 8], strides = [1, 1]} : vector<16x192xf32> to vector<16x8xf32>
      %c5_54 = arith.constant 5 : index
      %c0_55 = arith.constant 0 : index
      %c0_56 = arith.constant 0 : index
      %84 = vector.load %arg10[%c5_54, %c0_55, %c0_56] : memref<8x16x8xf32, #tpu.memory_space<vmem>>, vector<1x16x8xf32>
      %85 = vector.shape_cast %84 : vector<1x16x8xf32> to vector<16x8xf32>
      %86 = vector.shape_cast %83 : vector<16x8xf32> to vector<1x16x8xf32>
      tpu.vector_store %arg10[%c5_54, %c0_55, %c0_56], %86 {strides = array<i32>} : memref<8x16x8xf32, #tpu.memory_space<vmem>>, vector<1x16x8xf32>,
      %87 = vector.extract_strided_slice %14 {offsets = [0, 48], sizes = [16, 8], strides = [1, 1]} : vector<16x192xf32> to vector<16x8xf32>
      %c6 = arith.constant 6 : index
      %c0_57 = arith.constant 0 : index
      %c0_58 = arith.constant 0 : index
      %88 = vector.load %arg8[%c6, %c0_57, %c0_58] : memref<8x16x8xf32, #tpu.memory_space<vmem>>, vector<1x16x8xf32>
      %89 = vector.shape_cast %88 : vector<1x16x8xf32> to vector<16x8xf32>
      %90 = vector.shape_cast %87 : vector<16x8xf32> to vector<1x16x8xf32>
      tpu.vector_store %arg8[%c6, %c0_57, %c0_58], %90 {strides = array<i32>} : memref<8x16x8xf32, #tpu.memory_space<vmem>>, vector<1x16x8xf32>,
      %91 = vector.extract_strided_slice %14 {offsets = [0, 112], sizes = [16, 8], strides = [1, 1]} : vector<16x192xf32> to vector<16x8xf32>
      %c6_59 = arith.constant 6 : index
      %c0_60 = arith.constant 0 : index
      %c0_61 = arith.constant 0 : index
      %92 = vector.load %arg9[%c6_59, %c0_60, %c0_61] : memref<8x16x8xf32, #tpu.memory_space<vmem>>, vector<1x16x8xf32>
      %93 = vector.shape_cast %92 : vector<1x16x8xf32> to vector<16x8xf32>
      %94 = vector.shape_cast %91 : vector<16x8xf32> to vector<1x16x8xf32>
      tpu.vector_store %arg9[%c6_59, %c0_60, %c0_61], %94 {strides = array<i32>} : memref<8x16x8xf32, #tpu.memory_space<vmem>>, vector<1x16x8xf32>,
      %95 = vector.extract_strided_slice %14 {offsets = [0, 176], sizes = [16, 8], strides = [1, 1]} : vector<16x192xf32> to vector<16x8xf32>
      %c6_62 = arith.constant 6 : index
      %c0_63 = arith.constant 0 : index
      %c0_64 = arith.constant 0 : index
      %96 = vector.load %arg10[%c6_62, %c0_63, %c0_64] : memref<8x16x8xf32, #tpu.memory_space<vmem>>, vector<1x16x8xf32>
      %97 = vector.shape_cast %96 : vector<1x16x8xf32> to vector<16x8xf32>
      %98 = vector.shape_cast %95 : vector<16x8xf32> to vector<1x16x8xf32>
      tpu.vector_store %arg10[%c6_62, %c0_63, %c0_64], %98 {strides = array<i32>} : memref<8x16x8xf32, #tpu.memory_space<vmem>>, vector<1x16x8xf32>,
      %99 = vector.extract_strided_slice %14 {offsets = [0, 56], sizes = [16, 8], strides = [1, 1]} : vector<16x192xf32> to vector<16x8xf32>
      %c7 = arith.constant 7 : index
      %c0_65 = arith.constant 0 : index
      %c0_66 = arith.constant 0 : index
      %100 = vector.load %arg8[%c7, %c0_65, %c0_66] : memref<8x16x8xf32, #tpu.memory_space<vmem>>, vector<1x16x8xf32>
      %101 = vector.shape_cast %100 : vector<1x16x8xf32> to vector<16x8xf32>
      %102 = vector.shape_cast %99 : vector<16x8xf32> to vector<1x16x8xf32>
      tpu.vector_store %arg8[%c7, %c0_65, %c0_66], %102 {strides = array<i32>} : memref<8x16x8xf32, #tpu.memory_space<vmem>>, vector<1x16x8xf32>,
      %103 = vector.extract_strided_slice %14 {offsets = [0, 120], sizes = [16, 8], strides = [1, 1]} : vector<16x192xf32> to vector<16x8xf32>
      %c7_67 = arith.constant 7 : index
      %c0_68 = arith.constant 0 : index
      %c0_69 = arith.constant 0 : index
      %104 = vector.load %arg9[%c7_67, %c0_68, %c0_69] : memref<8x16x8xf32, #tpu.memory_space<vmem>>, vector<1x16x8xf32>
      %105 = vector.shape_cast %104 : vector<1x16x8xf32> to vector<16x8xf32>
      %106 = vector.shape_cast %103 : vector<16x8xf32> to vector<1x16x8xf32>
      tpu.vector_store %arg9[%c7_67, %c0_68, %c0_69], %106 {strides = array<i32>} : memref<8x16x8xf32, #tpu.memory_space<vmem>>, vector<1x16x8xf32>,
      %107 = vector.extract_strided_slice %14 {offsets = [0, 184], sizes = [16, 8], strides = [1, 1]} : vector<16x192xf32> to vector<16x8xf32>
      %c7_70 = arith.constant 7 : index
      %c0_71 = arith.constant 0 : index
      %c0_72 = arith.constant 0 : index
      %108 = vector.load %arg10[%c7_70, %c0_71, %c0_72] : memref<8x16x8xf32, #tpu.memory_space<vmem>>, vector<1x16x8xf32>
      %109 = vector.shape_cast %108 : vector<1x16x8xf32> to vector<16x8xf32>
      %110 = vector.shape_cast %107 : vector<16x8xf32> to vector<1x16x8xf32>
      tpu.vector_store %arg10[%c7_70, %c0_71, %c0_72], %110 {strides = array<i32>} : memref<8x16x8xf32, #tpu.memory_space<vmem>>, vector<1x16x8xf32>,
    } else {
    }
    %c0 = arith.constant 0 : index
    %3 = memref.load %arg2[%c0] : memref<1xi32, #tpu.memory_space<smem>>
    %c16_i32 = arith.constant 16 : i32
    %4 = arith.muli %arg1, %c16_i32 : i32
    %5 = arith.cmpi slt, %4, %3 : i32
    %6 = arith.extui %5 : i1 to i32
    %c0_i32_1 = arith.constant 0 : i32
    %7 = arith.cmpi ne, %6, %c0_i32_1 : i32
    scf.if %7 {
      %11 = tpu.iota {dimensions = array<i32: 1>} : vector<1x16xi32>
      %12 = vector.broadcast %3 : i32 to vector<1x16xi32>
      %13 = arith.cmpi slt, %11, %12 : vector<1x16xi32>
      %14 = tpu.assume_multiple %4, 16 : i32
      %c0_3 = arith.constant 0 : index
      %15 = arith.index_cast %14 : i32 to index
      %c0_4 = arith.constant 0 : index
      %16 = vector.load %arg8[%c0_3, %15, %c0_4] : memref<8x16x8xf32, #tpu.memory_space<vmem>>, vector<1x16x8xf32>
      %17 = vector.shape_cast %16 : vector<1x16x8xf32> to vector<16x8xf32>
      %c0_5 = arith.constant 0 : index
      %c0_6 = arith.constant 0 : index
      %c0_7 = arith.constant 0 : index
      %18 = vector.load %arg9[%c0_5, %c0_6, %c0_7] : memref<8x16x8xf32, #tpu.memory_space<vmem>>, vector<1x16x8xf32>
      %19 = vector.shape_cast %18 : vector<1x16x8xf32> to vector<16x8xf32>
      %c0_8 = arith.constant 0 : index
      %c0_9 = arith.constant 0 : index
      %c0_10 = arith.constant 0 : index
      %20 = vector.load %arg10[%c0_8, %c0_9, %c0_10] : memref<8x16x8xf32, #tpu.memory_space<vmem>>, vector<1x16x8xf32>
      %21 = vector.shape_cast %20 : vector<1x16x8xf32> to vector<16x8xf32>
      %cst = arith.constant dense<0.000000e+00> : vector<16x16xf32>
      %22 = tpu.matmul %17, %19, %cst {dimension_numbers = #tpu.dot_dimension_numbers<[1], [1], [0], [0], [0, 0, 1, 0], [], []>} : vector<16x8xf32>, vector<16x8xf32>, vector<16x16xf32> -> vector<16x16xf32>
      %cst_11 = arith.constant -1.000000e+30 : f32
      %23 = vector.shape_cast %13 : vector<1x16xi1> to vector<1x16xi1>
      %24 = vector.broadcast %23 : vector<1x16xi1> to vector<16x16xi1>
      %25 = vector.broadcast %cst_11 : f32 to vector<16x16xf32>
      %26 = arith.select %24, %22, %25 : vector<16x16xi1>, vector<16x16xf32>
      %cst_12 = arith.constant dense<0xFF800000> : vector<16xf32>
      %27 = vector.multi_reduction <maximumf>, %26, %cst_12 [1] : vector<16x16xf32> to vector<16xf32>
      %28 = vector.shape_cast %27 : vector<16xf32> to vector<16x1xf32>
      %29 = vector.broadcast %28 : vector<16x1xf32> to vector<16x16xf32>
      %30 = arith.subf %26, %29 : vector<16x16xf32>
      %31 = math.exp %30 : vector<16x16xf32>
      %cst_13 = arith.constant dense<0.000000e+00> : vector<16xf32>
      %32 = vector.multi_reduction <add>, %31, %cst_13 [1] : vector<16x16xf32> to vector<16xf32>
      %33 = vector.shape_cast %32 : vector<16xf32> to vector<16x1xf32>
      %34 = tpu.reciprocal %33 : vector<16x1xf32> -> vector<16x1xf32>
      %35 = vector.broadcast %34 : vector<16x1xf32> to vector<16x16xf32>
      %36 = arith.mulf %31, %35 : vector<16x16xf32>
      %cst_14 = arith.constant dense<0.000000e+00> : vector<16x8xf32>
      %37 = tpu.matmul %36, %21, %cst_14 {dimension_numbers = #tpu.dot_dimension_numbers<[1], [0], [0], [1], [0, 0, 1, 1], [], []>} : vector<16x16xf32>, vector<16x8xf32>, vector<16x8xf32> -> vector<16x8xf32>
      %c0_15 = arith.constant 0 : index
      %c0_16 = arith.constant 0 : index
      %38 = vector.load %arg11[%c0_15, %c0_16] : memref<16x64xf32, #tpu.memory_space<vmem>>, vector<16x8xf32>
      tpu.vector_store %arg11[%c0_15, %c0_16], %37 {strides = array<i32>} : memref<16x64xf32, #tpu.memory_space<vmem>>, vector<16x8xf32>,
      %c1 = arith.constant 1 : index
      %39 = arith.index_cast %14 : i32 to index
      %c0_17 = arith.constant 0 : index
      %40 = vector.load %arg8[%c1, %39, %c0_17] : memref<8x16x8xf32, #tpu.memory_space<vmem>>, vector<1x16x8xf32>
      %41 = vector.shape_cast %40 : vector<1x16x8xf32> to vector<16x8xf32>
      %c1_18 = arith.constant 1 : index
      %c0_19 = arith.constant 0 : index
      %c0_20 = arith.constant 0 : index
      %42 = vector.load %arg9[%c1_18, %c0_19, %c0_20] : memref<8x16x8xf32, #tpu.memory_space<vmem>>, vector<1x16x8xf32>
      %43 = vector.shape_cast %42 : vector<1x16x8xf32> to vector<16x8xf32>
      %c1_21 = arith.constant 1 : index
      %c0_22 = arith.constant 0 : index
      %c0_23 = arith.constant 0 : index
      %44 = vector.load %arg10[%c1_21, %c0_22, %c0_23] : memref<8x16x8xf32, #tpu.memory_space<vmem>>, vector<1x16x8xf32>
      %45 = vector.shape_cast %44 : vector<1x16x8xf32> to vector<16x8xf32>
      %cst_24 = arith.constant dense<0.000000e+00> : vector<16x16xf32>
      %46 = tpu.matmul %41, %43, %cst_24 {dimension_numbers = #tpu.dot_dimension_numbers<[1], [1], [0], [0], [0, 0, 1, 0], [], []>} : vector<16x8xf32>, vector<16x8xf32>, vector<16x16xf32> -> vector<16x16xf32>
      %cst_25 = arith.constant -1.000000e+30 : f32
      %47 = vector.shape_cast %13 : vector<1x16xi1> to vector<1x16xi1>
      %48 = vector.broadcast %47 : vector<1x16xi1> to vector<16x16xi1>
      %49 = vector.broadcast %cst_25 : f32 to vector<16x16xf32>
      %50 = arith.select %48, %46, %49 : vector<16x16xi1>, vector<16x16xf32>
      %cst_26 = arith.constant dense<0xFF800000> : vector<16xf32>
      %51 = vector.multi_reduction <maximumf>, %50, %cst_26 [1] : vector<16x16xf32> to vector<16xf32>
      %52 = vector.shape_cast %51 : vector<16xf32> to vector<16x1xf32>
      %53 = vector.broadcast %52 : vector<16x1xf32> to vector<16x16xf32>
      %54 = arith.subf %50, %53 : vector<16x16xf32>
      %55 = math.exp %54 : vector<16x16xf32>
      %cst_27 = arith.constant dense<0.000000e+00> : vector<16xf32>
      %56 = vector.multi_reduction <add>, %55, %cst_27 [1] : vector<16x16xf32> to vector<16xf32>
      %57 = vector.shape_cast %56 : vector<16xf32> to vector<16x1xf32>
      %58 = tpu.reciprocal %57 : vector<16x1xf32> -> vector<16x1xf32>
      %59 = vector.broadcast %58 : vector<16x1xf32> to vector<16x16xf32>
      %60 = arith.mulf %55, %59 : vector<16x16xf32>
      %cst_28 = arith.constant dense<0.000000e+00> : vector<16x8xf32>
      %61 = tpu.matmul %60, %45, %cst_28 {dimension_numbers = #tpu.dot_dimension_numbers<[1], [0], [0], [1], [0, 0, 1, 1], [], []>} : vector<16x16xf32>, vector<16x8xf32>, vector<16x8xf32> -> vector<16x8xf32>
      %c0_29 = arith.constant 0 : index
      %c8 = arith.constant 8 : index
      %62 = vector.load %arg11[%c0_29, %c8] : memref<16x64xf32, #tpu.memory_space<vmem>>, vector<16x8xf32>
      tpu.vector_store %arg11[%c0_29, %c8], %61 {strides = array<i32>} : memref<16x64xf32, #tpu.memory_space<vmem>>, vector<16x8xf32>,
      %c2 = arith.constant 2 : index
      %63 = arith.index_cast %14 : i32 to index
      %c0_30 = arith.constant 0 : index
      %64 = vector.load %arg8[%c2, %63, %c0_30] : memref<8x16x8xf32, #tpu.memory_space<vmem>>, vector<1x16x8xf32>
      %65 = vector.shape_cast %64 : vector<1x16x8xf32> to vector<16x8xf32>
      %c2_31 = arith.constant 2 : index
      %c0_32 = arith.constant 0 : index
      %c0_33 = arith.constant 0 : index
      %66 = vector.load %arg9[%c2_31, %c0_32, %c0_33] : memref<8x16x8xf32, #tpu.memory_space<vmem>>, vector<1x16x8xf32>
      %67 = vector.shape_cast %66 : vector<1x16x8xf32> to vector<16x8xf32>
      %c2_34 = arith.constant 2 : index
      %c0_35 = arith.constant 0 : index
      %c0_36 = arith.constant 0 : index
      %68 = vector.load %arg10[%c2_34, %c0_35, %c0_36] : memref<8x16x8xf32, #tpu.memory_space<vmem>>, vector<1x16x8xf32>
      %69 = vector.shape_cast %68 : vector<1x16x8xf32> to vector<16x8xf32>
      %cst_37 = arith.constant dense<0.000000e+00> : vector<16x16xf32>
      %70 = tpu.matmul %65, %67, %cst_37 {dimension_numbers = #tpu.dot_dimension_numbers<[1], [1], [0], [0], [0, 0, 1, 0], [], []>} : vector<16x8xf32>, vector<16x8xf32>, vector<16x16xf32> -> vector<16x16xf32>
      %cst_38 = arith.constant -1.000000e+30 : f32
      %71 = vector.shape_cast %13 : vector<1x16xi1> to vector<1x16xi1>
      %72 = vector.broadcast %71 : vector<1x16xi1> to vector<16x16xi1>
      %73 = vector.broadcast %cst_38 : f32 to vector<16x16xf32>
      %74 = arith.select %72, %70, %73 : vector<16x16xi1>, vector<16x16xf32>
      %cst_39 = arith.constant dense<0xFF800000> : vector<16xf32>
      %75 = vector.multi_reduction <maximumf>, %74, %cst_39 [1] : vector<16x16xf32> to vector<16xf32>
      %76 = vector.shape_cast %75 : vector<16xf32> to vector<16x1xf32>
      %77 = vector.broadcast %76 : vector<16x1xf32> to vector<16x16xf32>
      %78 = arith.subf %74, %77 : vector<16x16xf32>
      %79 = math.exp %78 : vector<16x16xf32>
      %cst_40 = arith.constant dense<0.000000e+00> : vector<16xf32>
      %80 = vector.multi_reduction <add>, %79, %cst_40 [1] : vector<16x16xf32> to vector<16xf32>
      %81 = vector.shape_cast %80 : vector<16xf32> to vector<16x1xf32>
      %82 = tpu.reciprocal %81 : vector<16x1xf32> -> vector<16x1xf32>
      %83 = vector.broadcast %82 : vector<16x1xf32> to vector<16x16xf32>
      %84 = arith.mulf %79, %83 : vector<16x16xf32>
      %cst_41 = arith.constant dense<0.000000e+00> : vector<16x8xf32>
      %85 = tpu.matmul %84, %69, %cst_41 {dimension_numbers = #tpu.dot_dimension_numbers<[1], [0], [0], [1], [0, 0, 1, 1], [], []>} : vector<16x16xf32>, vector<16x8xf32>, vector<16x8xf32> -> vector<16x8xf32>
      %c0_42 = arith.constant 0 : index
      %c16 = arith.constant 16 : index
      %86 = vector.load %arg11[%c0_42, %c16] : memref<16x64xf32, #tpu.memory_space<vmem>>, vector<16x8xf32>
      tpu.vector_store %arg11[%c0_42, %c16], %85 {strides = array<i32>} : memref<16x64xf32, #tpu.memory_space<vmem>>, vector<16x8xf32>,
      %c3 = arith.constant 3 : index
      %87 = arith.index_cast %14 : i32 to index
      %c0_43 = arith.constant 0 : index
      %88 = vector.load %arg8[%c3, %87, %c0_43] : memref<8x16x8xf32, #tpu.memory_space<vmem>>, vector<1x16x8xf32>
      %89 = vector.shape_cast %88 : vector<1x16x8xf32> to vector<16x8xf32>
      %c3_44 = arith.constant 3 : index
      %c0_45 = arith.constant 0 : index
      %c0_46 = arith.constant 0 : index
      %90 = vector.load %arg9[%c3_44, %c0_45, %c0_46] : memref<8x16x8xf32, #tpu.memory_space<vmem>>, vector<1x16x8xf32>
      %91 = vector.shape_cast %90 : vector<1x16x8xf32> to vector<16x8xf32>
      %c3_47 = arith.constant 3 : index
      %c0_48 = arith.constant 0 : index
      %c0_49 = arith.constant 0 : index
      %92 = vector.load %arg10[%c3_47, %c0_48, %c0_49] : memref<8x16x8xf32, #tpu.memory_space<vmem>>, vector<1x16x8xf32>
      %93 = vector.shape_cast %92 : vector<1x16x8xf32> to vector<16x8xf32>
      %cst_50 = arith.constant dense<0.000000e+00> : vector<16x16xf32>
      %94 = tpu.matmul %89, %91, %cst_50 {dimension_numbers = #tpu.dot_dimension_numbers<[1], [1], [0], [0], [0, 0, 1, 0], [], []>} : vector<16x8xf32>, vector<16x8xf32>, vector<16x16xf32> -> vector<16x16xf32>
      %cst_51 = arith.constant -1.000000e+30 : f32
      %95 = vector.shape_cast %13 : vector<1x16xi1> to vector<1x16xi1>
      %96 = vector.broadcast %95 : vector<1x16xi1> to vector<16x16xi1>
      %97 = vector.broadcast %cst_51 : f32 to vector<16x16xf32>
      %98 = arith.select %96, %94, %97 : vector<16x16xi1>, vector<16x16xf32>
      %cst_52 = arith.constant dense<0xFF800000> : vector<16xf32>
      %99 = vector.multi_reduction <maximumf>, %98, %cst_52 [1] : vector<16x16xf32> to vector<16xf32>
      %100 = vector.shape_cast %99 : vector<16xf32> to vector<16x1xf32>
      %101 = vector.broadcast %100 : vector<16x1xf32> to vector<16x16xf32>
      %102 = arith.subf %98, %101 : vector<16x16xf32>
      %103 = math.exp %102 : vector<16x16xf32>
      %cst_53 = arith.constant dense<0.000000e+00> : vector<16xf32>
      %104 = vector.multi_reduction <add>, %103, %cst_53 [1] : vector<16x16xf32> to vector<16xf32>
      %105 = vector.shape_cast %104 : vector<16xf32> to vector<16x1xf32>
      %106 = tpu.reciprocal %105 : vector<16x1xf32> -> vector<16x1xf32>
      %107 = vector.broadcast %106 : vector<16x1xf32> to vector<16x16xf32>
      %108 = arith.mulf %103, %107 : vector<16x16xf32>
      %cst_54 = arith.constant dense<0.000000e+00> : vector<16x8xf32>
      %109 = tpu.matmul %108, %93, %cst_54 {dimension_numbers = #tpu.dot_dimension_numbers<[1], [0], [0], [1], [0, 0, 1, 1], [], []>} : vector<16x16xf32>, vector<16x8xf32>, vector<16x8xf32> -> vector<16x8xf32>
      %c0_55 = arith.constant 0 : index
      %c24 = arith.constant 24 : index
      %110 = vector.load %arg11[%c0_55, %c24] : memref<16x64xf32, #tpu.memory_space<vmem>>, vector<16x8xf32>
      tpu.vector_store %arg11[%c0_55, %c24], %109 {strides = array<i32>} : memref<16x64xf32, #tpu.memory_space<vmem>>, vector<16x8xf32>,
      %c4 = arith.constant 4 : index
      %111 = arith.index_cast %14 : i32 to index
      %c0_56 = arith.constant 0 : index
      %112 = vector.load %arg8[%c4, %111, %c0_56] : memref<8x16x8xf32, #tpu.memory_space<vmem>>, vector<1x16x8xf32>
      %113 = vector.shape_cast %112 : vector<1x16x8xf32> to vector<16x8xf32>
      %c4_57 = arith.constant 4 : index
      %c0_58 = arith.constant 0 : index
      %c0_59 = arith.constant 0 : index
      %114 = vector.load %arg9[%c4_57, %c0_58, %c0_59] : memref<8x16x8xf32, #tpu.memory_space<vmem>>, vector<1x16x8xf32>
      %115 = vector.shape_cast %114 : vector<1x16x8xf32> to vector<16x8xf32>
      %c4_60 = arith.constant 4 : index
      %c0_61 = arith.constant 0 : index
      %c0_62 = arith.constant 0 : index
      %116 = vector.load %arg10[%c4_60, %c0_61, %c0_62] : memref<8x16x8xf32, #tpu.memory_space<vmem>>, vector<1x16x8xf32>
      %117 = vector.shape_cast %116 : vector<1x16x8xf32> to vector<16x8xf32>
      %cst_63 = arith.constant dense<0.000000e+00> : vector<16x16xf32>
      %118 = tpu.matmul %113, %115, %cst_63 {dimension_numbers = #tpu.dot_dimension_numbers<[1], [1], [0], [0], [0, 0, 1, 0], [], []>} : vector<16x8xf32>, vector<16x8xf32>, vector<16x16xf32> -> vector<16x16xf32>
      %cst_64 = arith.constant -1.000000e+30 : f32
      %119 = vector.shape_cast %13 : vector<1x16xi1> to vector<1x16xi1>
      %120 = vector.broadcast %119 : vector<1x16xi1> to vector<16x16xi1>
      %121 = vector.broadcast %cst_64 : f32 to vector<16x16xf32>
      %122 = arith.select %120, %118, %121 : vector<16x16xi1>, vector<16x16xf32>
      %cst_65 = arith.constant dense<0xFF800000> : vector<16xf32>
      %123 = vector.multi_reduction <maximumf>, %122, %cst_65 [1] : vector<16x16xf32> to vector<16xf32>
      %124 = vector.shape_cast %123 : vector<16xf32> to vector<16x1xf32>
      %125 = vector.broadcast %124 : vector<16x1xf32> to vector<16x16xf32>
      %126 = arith.subf %122, %125 : vector<16x16xf32>
      %127 = math.exp %126 : vector<16x16xf32>
      %cst_66 = arith.constant dense<0.000000e+00> : vector<16xf32>
      %128 = vector.multi_reduction <add>, %127, %cst_66 [1] : vector<16x16xf32> to vector<16xf32>
      %129 = vector.shape_cast %128 : vector<16xf32> to vector<16x1xf32>
      %130 = tpu.reciprocal %129 : vector<16x1xf32> -> vector<16x1xf32>
      %131 = vector.broadcast %130 : vector<16x1xf32> to vector<16x16xf32>
      %132 = arith.mulf %127, %131 : vector<16x16xf32>
      %cst_67 = arith.constant dense<0.000000e+00> : vector<16x8xf32>
      %133 = tpu.matmul %132, %117, %cst_67 {dimension_numbers = #tpu.dot_dimension_numbers<[1], [0], [0], [1], [0, 0, 1, 1], [], []>} : vector<16x16xf32>, vector<16x8xf32>, vector<16x8xf32> -> vector<16x8xf32>
      %c0_68 = arith.constant 0 : index
      %c32 = arith.constant 32 : index
      %134 = vector.load %arg11[%c0_68, %c32] : memref<16x64xf32, #tpu.memory_space<vmem>>, vector<16x8xf32>
      tpu.vector_store %arg11[%c0_68, %c32], %133 {strides = array<i32>} : memref<16x64xf32, #tpu.memory_space<vmem>>, vector<16x8xf32>,
      %c5 = arith.constant 5 : index
      %135 = arith.index_cast %14 : i32 to index
      %c0_69 = arith.constant 0 : index
      %136 = vector.load %arg8[%c5, %135, %c0_69] : memref<8x16x8xf32, #tpu.memory_space<vmem>>, vector<1x16x8xf32>
      %137 = vector.shape_cast %136 : vector<1x16x8xf32> to vector<16x8xf32>
      %c5_70 = arith.constant 5 : index
      %c0_71 = arith.constant 0 : index
      %c0_72 = arith.constant 0 : index
      %138 = vector.load %arg9[%c5_70, %c0_71, %c0_72] : memref<8x16x8xf32, #tpu.memory_space<vmem>>, vector<1x16x8xf32>
      %139 = vector.shape_cast %138 : vector<1x16x8xf32> to vector<16x8xf32>
      %c5_73 = arith.constant 5 : index
      %c0_74 = arith.constant 0 : index
      %c0_75 = arith.constant 0 : index
      %140 = vector.load %arg10[%c5_73, %c0_74, %c0_75] : memref<8x16x8xf32, #tpu.memory_space<vmem>>, vector<1x16x8xf32>
      %141 = vector.shape_cast %140 : vector<1x16x8xf32> to vector<16x8xf32>
      %cst_76 = arith.constant dense<0.000000e+00> : vector<16x16xf32>
      %142 = tpu.matmul %137, %139, %cst_76 {dimension_numbers = #tpu.dot_dimension_numbers<[1], [1], [0], [0], [0, 0, 1, 0], [], []>} : vector<16x8xf32>, vector<16x8xf32>, vector<16x16xf32> -> vector<16x16xf32>
      %cst_77 = arith.constant -1.000000e+30 : f32
      %143 = vector.shape_cast %13 : vector<1x16xi1> to vector<1x16xi1>
      %144 = vector.broadcast %143 : vector<1x16xi1> to vector<16x16xi1>
      %145 = vector.broadcast %cst_77 : f32 to vector<16x16xf32>
      %146 = arith.select %144, %142, %145 : vector<16x16xi1>, vector<16x16xf32>
      %cst_78 = arith.constant dense<0xFF800000> : vector<16xf32>
      %147 = vector.multi_reduction <maximumf>, %146, %cst_78 [1] : vector<16x16xf32> to vector<16xf32>
      %148 = vector.shape_cast %147 : vector<16xf32> to vector<16x1xf32>
      %149 = vector.broadcast %148 : vector<16x1xf32> to vector<16x16xf32>
      %150 = arith.subf %146, %149 : vector<16x16xf32>
      %151 = math.exp %150 : vector<16x16xf32>
      %cst_79 = arith.constant dense<0.000000e+00> : vector<16xf32>
      %152 = vector.multi_reduction <add>, %151, %cst_79 [1] : vector<16x16xf32> to vector<16xf32>
      %153 = vector.shape_cast %152 : vector<16xf32> to vector<16x1xf32>
      %154 = tpu.reciprocal %153 : vector<16x1xf32> -> vector<16x1xf32>
      %155 = vector.broadcast %154 : vector<16x1xf32> to vector<16x16xf32>
      %156 = arith.mulf %151, %155 : vector<16x16xf32>
      %cst_80 = arith.constant dense<0.000000e+00> : vector<16x8xf32>
      %157 = tpu.matmul %156, %141, %cst_80 {dimension_numbers = #tpu.dot_dimension_numbers<[1], [0], [0], [1], [0, 0, 1, 1], [], []>} : vector<16x16xf32>, vector<16x8xf32>, vector<16x8xf32> -> vector<16x8xf32>
      %c0_81 = arith.constant 0 : index
      %c40 = arith.constant 40 : index
      %158 = vector.load %arg11[%c0_81, %c40] : memref<16x64xf32, #tpu.memory_space<vmem>>, vector<16x8xf32>
      tpu.vector_store %arg11[%c0_81, %c40], %157 {strides = array<i32>} : memref<16x64xf32, #tpu.memory_space<vmem>>, vector<16x8xf32>,
      %c6 = arith.constant 6 : index
      %159 = arith.index_cast %14 : i32 to index
      %c0_82 = arith.constant 0 : index
      %160 = vector.load %arg8[%c6, %159, %c0_82] : memref<8x16x8xf32, #tpu.memory_space<vmem>>, vector<1x16x8xf32>
      %161 = vector.shape_cast %160 : vector<1x16x8xf32> to vector<16x8xf32>
      %c6_83 = arith.constant 6 : index
      %c0_84 = arith.constant 0 : index
      %c0_85 = arith.constant 0 : index
      %162 = vector.load %arg9[%c6_83, %c0_84, %c0_85] : memref<8x16x8xf32, #tpu.memory_space<vmem>>, vector<1x16x8xf32>
      %163 = vector.shape_cast %162 : vector<1x16x8xf32> to vector<16x8xf32>
      %c6_86 = arith.constant 6 : index
      %c0_87 = arith.constant 0 : index
      %c0_88 = arith.constant 0 : index
      %164 = vector.load %arg10[%c6_86, %c0_87, %c0_88] : memref<8x16x8xf32, #tpu.memory_space<vmem>>, vector<1x16x8xf32>
      %165 = vector.shape_cast %164 : vector<1x16x8xf32> to vector<16x8xf32>
      %cst_89 = arith.constant dense<0.000000e+00> : vector<16x16xf32>
      %166 = tpu.matmul %161, %163, %cst_89 {dimension_numbers = #tpu.dot_dimension_numbers<[1], [1], [0], [0], [0, 0, 1, 0], [], []>} : vector<16x8xf32>, vector<16x8xf32>, vector<16x16xf32> -> vector<16x16xf32>
      %cst_90 = arith.constant -1.000000e+30 : f32
      %167 = vector.shape_cast %13 : vector<1x16xi1> to vector<1x16xi1>
      %168 = vector.broadcast %167 : vector<1x16xi1> to vector<16x16xi1>
      %169 = vector.broadcast %cst_90 : f32 to vector<16x16xf32>
      %170 = arith.select %168, %166, %169 : vector<16x16xi1>, vector<16x16xf32>
      %cst_91 = arith.constant dense<0xFF800000> : vector<16xf32>
      %171 = vector.multi_reduction <maximumf>, %170, %cst_91 [1] : vector<16x16xf32> to vector<16xf32>
      %172 = vector.shape_cast %171 : vector<16xf32> to vector<16x1xf32>
      %173 = vector.broadcast %172 : vector<16x1xf32> to vector<16x16xf32>
      %174 = arith.subf %170, %173 : vector<16x16xf32>
      %175 = math.exp %174 : vector<16x16xf32>
      %cst_92 = arith.constant dense<0.000000e+00> : vector<16xf32>
      %176 = vector.multi_reduction <add>, %175, %cst_92 [1] : vector<16x16xf32> to vector<16xf32>
      %177 = vector.shape_cast %176 : vector<16xf32> to vector<16x1xf32>
      %178 = tpu.reciprocal %177 : vector<16x1xf32> -> vector<16x1xf32>
      %179 = vector.broadcast %178 : vector<16x1xf32> to vector<16x16xf32>
      %180 = arith.mulf %175, %179 : vector<16x16xf32>
      %cst_93 = arith.constant dense<0.000000e+00> : vector<16x8xf32>
      %181 = tpu.matmul %180, %165, %cst_93 {dimension_numbers = #tpu.dot_dimension_numbers<[1], [0], [0], [1], [0, 0, 1, 1], [], []>} : vector<16x16xf32>, vector<16x8xf32>, vector<16x8xf32> -> vector<16x8xf32>
      %c0_94 = arith.constant 0 : index
      %c48 = arith.constant 48 : index
      %182 = vector.load %arg11[%c0_94, %c48] : memref<16x64xf32, #tpu.memory_space<vmem>>, vector<16x8xf32>
      tpu.vector_store %arg11[%c0_94, %c48], %181 {strides = array<i32>} : memref<16x64xf32, #tpu.memory_space<vmem>>, vector<16x8xf32>,
      %c7 = arith.constant 7 : index
      %183 = arith.index_cast %14 : i32 to index
      %c0_95 = arith.constant 0 : index
      %184 = vector.load %arg8[%c7, %183, %c0_95] : memref<8x16x8xf32, #tpu.memory_space<vmem>>, vector<1x16x8xf32>
      %185 = vector.shape_cast %184 : vector<1x16x8xf32> to vector<16x8xf32>
      %c7_96 = arith.constant 7 : index
      %c0_97 = arith.constant 0 : index
      %c0_98 = arith.constant 0 : index
      %186 = vector.load %arg9[%c7_96, %c0_97, %c0_98] : memref<8x16x8xf32, #tpu.memory_space<vmem>>, vector<1x16x8xf32>
      %187 = vector.shape_cast %186 : vector<1x16x8xf32> to vector<16x8xf32>
      %c7_99 = arith.constant 7 : index
      %c0_100 = arith.constant 0 : index
      %c0_101 = arith.constant 0 : index
      %188 = vector.load %arg10[%c7_99, %c0_100, %c0_101] : memref<8x16x8xf32, #tpu.memory_space<vmem>>, vector<1x16x8xf32>
      %189 = vector.shape_cast %188 : vector<1x16x8xf32> to vector<16x8xf32>
      %cst_102 = arith.constant dense<0.000000e+00> : vector<16x16xf32>
      %190 = tpu.matmul %185, %187, %cst_102 {dimension_numbers = #tpu.dot_dimension_numbers<[1], [1], [0], [0], [0, 0, 1, 0], [], []>} : vector<16x8xf32>, vector<16x8xf32>, vector<16x16xf32> -> vector<16x16xf32>
      %cst_103 = arith.constant -1.000000e+30 : f32
      %191 = vector.shape_cast %13 : vector<1x16xi1> to vector<1x16xi1>
      %192 = vector.broadcast %191 : vector<1x16xi1> to vector<16x16xi1>
      %193 = vector.broadcast %cst_103 : f32 to vector<16x16xf32>
      %194 = arith.select %192, %190, %193 : vector<16x16xi1>, vector<16x16xf32>
      %cst_104 = arith.constant dense<0xFF800000> : vector<16xf32>
      %195 = vector.multi_reduction <maximumf>, %194, %cst_104 [1] : vector<16x16xf32> to vector<16xf32>
      %196 = vector.shape_cast %195 : vector<16xf32> to vector<16x1xf32>
      %197 = vector.broadcast %196 : vector<16x1xf32> to vector<16x16xf32>
      %198 = arith.subf %194, %197 : vector<16x16xf32>
      %199 = math.exp %198 : vector<16x16xf32>
      %cst_105 = arith.constant dense<0.000000e+00> : vector<16xf32>
      %200 = vector.multi_reduction <add>, %199, %cst_105 [1] : vector<16x16xf32> to vector<16xf32>
      %201 = vector.shape_cast %200 : vector<16xf32> to vector<16x1xf32>
      %202 = tpu.reciprocal %201 : vector<16x1xf32> -> vector<16x1xf32>
      %203 = vector.broadcast %202 : vector<16x1xf32> to vector<16x16xf32>
      %204 = arith.mulf %199, %203 : vector<16x16xf32>
      %cst_106 = arith.constant dense<0.000000e+00> : vector<16x8xf32>
      %205 = tpu.matmul %204, %189, %cst_106 {dimension_numbers = #tpu.dot_dimension_numbers<[1], [0], [0], [1], [0, 0, 1, 1], [], []>} : vector<16x16xf32>, vector<16x8xf32>, vector<16x8xf32> -> vector<16x8xf32>
      %c0_107 = arith.constant 0 : index
      %c56 = arith.constant 56 : index
      %206 = vector.load %arg11[%c0_107, %c56] : memref<16x64xf32, #tpu.memory_space<vmem>>, vector<16x8xf32>
      tpu.vector_store %arg11[%c0_107, %c56], %205 {strides = array<i32>} : memref<16x64xf32, #tpu.memory_space<vmem>>, vector<16x8xf32>,
      %c0_108 = arith.constant 0 : index
      %c0_109 = arith.constant 0 : index
      %207 = vector.load %arg11[%c0_108, %c0_109] : memref<16x64xf32, #tpu.memory_space<vmem>>, vector<16x64xf32>
      %c0_110 = arith.constant 0 : index
      %c0_111 = arith.constant 0 : index
      %208 = vector.load %arg5[%c0_110, %c0_111] : memref<64x64xf32, #tpu.memory_space<vmem>>, vector<64x64xf32>
      %cst_112 = arith.constant dense<0.000000e+00> : vector<16x64xf32>
      %209 = tpu.matmul %207, %208, %cst_112 {dimension_numbers = #tpu.dot_dimension_numbers<[1], [0], [0], [1], [0, 0, 1, 1], [], []>} : vector<16x64xf32>, vector<64x64xf32>, vector<16x64xf32> -> vector<16x64xf32>
      %c0_113 = arith.constant 0 : index
      %c0_114 = arith.constant 0 : index
      %210 = vector.load %arg6[%c0_113, %c0_114] : memref<1x64xf32, #tpu.memory_space<vmem>>, vector<1x64xf32>
      %211 = vector.broadcast %210 : vector<1x64xf32> to vector<16x64xf32>
      %212 = arith.addf %209, %211 : vector<16x64xf32>
      %c0_115 = arith.constant 0 : index
      %c0_116 = arith.constant 0 : index
      %c0_117 = arith.constant 0 : index
      %213 = vector.load %arg7[%c0_115, %c0_116, %c0_117] : memref<1x16x64xf32, #tpu.memory_space<vmem>>, vector<1x16x64xf32>
      %214 = vector.shape_cast %213 : vector<1x16x64xf32> to vector<16x64xf32>
      %215 = vector.shape_cast %212 : vector<16x64xf32> to vector<1x16x64xf32>
      tpu.vector_store %arg7[%c0_115, %c0_116, %c0_117], %215 {strides = array<i32>} : memref<1x16x64xf32, #tpu.memory_space<vmem>>, vector<1x16x64xf32>,
    } else {
    }
    %8 = arith.cmpi sge, %4, %3 : i32
    %9 = arith.extui %8 : i1 to i32
    %c0_i32_2 = arith.constant 0 : i32
    %10 = arith.cmpi ne, %9, %c0_i32_2 : i32
    scf.if %10 {
      %cst = arith.constant 0.000000e+00 : f32
      %11 = vector.broadcast %cst : f32 to vector<16x64xf32>
      %c0_3 = arith.constant 0 : index
      %c0_4 = arith.constant 0 : index
      %c0_5 = arith.constant 0 : index
      %12 = vector.load %arg7[%c0_3, %c0_4, %c0_5] : memref<1x16x64xf32, #tpu.memory_space<vmem>>, vector<1x16x64xf32>
      %13 = vector.shape_cast %12 : vector<1x16x64xf32> to vector<16x64xf32>
      %14 = vector.shape_cast %11 : vector<16x64xf32> to vector<1x16x64xf32>
      tpu.vector_store %arg7[%c0_3, %c0_4, %c0_5], %14 {strides = array<i32>} : memref<1x16x64xf32, #tpu.memory_space<vmem>>, vector<1x16x64xf32>,
    } else {
    }
    return
  }
  func.func @transform_0(%arg0: i32, %arg1: i32, %arg2: memref<1xi32, #tpu.memory_space<smem>>) -> (i32, i32, i32) {
    %c0_i32 = arith.constant 0 : i32
    %c0_i32_0 = arith.constant 0 : i32
    %c0_i32_1 = arith.constant 0 : i32
    return %arg0, %c0_i32, %c0_i32_0 : i32, i32, i32
  }
  func.func @transform_1(%arg0: i32, %arg1: i32, %arg2: memref<1xi32, #tpu.memory_space<smem>>) -> (i32, i32) {
    %c0_i32 = arith.constant 0 : i32
    %c0_i32_0 = arith.constant 0 : i32
    %c0_i32_1 = arith.constant 0 : i32
    return %c0_i32, %c0_i32_0 : i32, i32
  }
  func.func @transform_2(%arg0: i32, %arg1: i32, %arg2: memref<1xi32, #tpu.memory_space<smem>>) -> (i32, i32) {
    %c0_i32 = arith.constant 0 : i32
    %c0_i32_0 = arith.constant 0 : i32
    %c0_i32_1 = arith.constant 0 : i32
    return %c0_i32, %c0_i32_0 : i32, i32
  }
  func.func @transform_3(%arg0: i32, %arg1: i32, %arg2: memref<1xi32, #tpu.memory_space<smem>>) -> (i32, i32) {
    %c0_i32 = arith.constant 0 : i32
    %c0_i32_0 = arith.constant 0 : i32
    %c0_i32_1 = arith.constant 0 : i32
    return %c0_i32, %c0_i32_0 : i32, i32
  }
  func.func @transform_4(%arg0: i32, %arg1: i32, %arg2: memref<1xi32, #tpu.memory_space<smem>>) -> (i32, i32, i32) {
    %c0_i32 = arith.constant 0 : i32
    %c0_i32_0 = arith.constant 0 : i32
    return %arg0, %arg1, %c0_i32 : i32, i32, i32
  }
}

</mosaic_0001>

<bundles_post_ra>
// kernel: tpu_custom_call.1
= control target key start
LH: loop header
LB: loop body
LE: loop exit
PB: predicated region body
PF: predicated region fallthrough
CT: control target
= control target key end

     0   :  { %s3987_s0 = inlined_call_operand.<no memory space> [shape: s32[1], index: 0, kind: input, shape index: {}]   ;;  %s3988_s1 = inlined_call_operand.hbm [shape: f32[2,16,64], index: 1, kind: input, shape index: {}]   ;;  %s3989_s2 = inlined_call_operand.hbm [shape: f32[64,192], index: 2, kind: input, shape index: {}]   ;;  %s3990_s3 = inlined_call_operand.hbm [shape: f32[64,64], index: 3, kind: input, shape index: {}]   ;;  %s3991_s4 = inlined_call_operand.hbm [shape: f32[1,64], index: 4, kind: input, shape index: {}]   ;;  %s3992_s5 = inlined_call_operand.hbm [shape: f32[2,16,64], index: 5, kind: output, shape index: {}]  }
   0x1   :  { %3997 = sst [smem:[#allocation21_spill]] %s3989_s2 }
   0x2   :  { %10 = sst [smem:[#allocation7]] %s3987_s0 }
   0x3   :  { %11 = vsyncpa [#allocation9], 0 }
   0x4   :  { %13 = vsyncpa [#allocation9 + $0x1], 0 }
   0x5   :  { %14 = vsyncpa [#allocation12], 0 }
   0x6   :  { %15 = vsyncpa [#allocation15], 0 }
   0x7   :  { %16 = vsyncpa [#allocation10], 0 }
   0x8   :  { %18 = vsyncpa [#allocation10 + $0x1], 0  ;;  %s3431_s20 = smov 0   ;;  %s3433_s21 = smov 0  }
   0x9   :  { %s3435_s22 = smov 0   ;;  %s3437_s23 = smov 0  }
   0xa   :  { %s3439_s24 = smov 0   ;;  %s3441_s25 = smov 0  }
   0xb LB: > { %s2553_s0 = sadd.s32 4294967295, %s3362_s25   ;;  %s2554_s26 = sadd.s32 4294967294, %s3362_s25   ;;  %s3362_s25 = sphi %s3441_s25, %s24_s25   ;;  %s3358_s24 = sphi %s3439_s24, %s4023_s24   ;;  %s3354_s23 = sphi %s3437_s23, %s4022_s23   ;;  %s3350_s22 = sphi %s3435_s22, %s4021_s22   ;;  %s3346_s21 = sphi %s3433_s21, %s4020_s21   ;;  %s3342_s20 = sphi %s3431_s20, %s4019_s20  }
   0xc   : > { %p56_p0 = scmp.ne.s32.totalorder %s3346_s21, %s3342_s20  ;;  %p3465_p1 = scmp.eq.s32.totalorder %s2553_s0, 0 }
   0xd   : > { %p3469_p2 = scmp.eq.s32.totalorder %s2553_s0, 1  ;;  %p151_p3 = scmp.eq.s32.totalorder %s2554_s26, 1 }
   0xe   : > { %s3998_s27 = scalar_select %p3465_p1, 1, 0 }
   0xf   : > { %s3999_s28 = scalar_select %p3469_p2, 1, 0 }
  0x10   : > { %p3475_p4 = por %p3465_p1, %p56_p0  ;;  %p2555_p5 = scmp.ge.s32.totalorder %s3362_s25, 1 }
  0x11   : > { %p3480_p6 = por %p151_p3, %p56_p0  ;;  %p158_p7 = scmp.lt.s32.totalorder %s3362_s25, 3 }
  0x12   : > { %s4000_s29 = scalar_select %p3475_p4, 1, 0 }
  0x13   : > { %s4001_s30 = scalar_select %p3480_p6, 1, 0 }
  0x14   : > { %p3485_p8 = pnand %p2555_p5, %p158_p7  ;;  %s3364_s7 = smov [#allocation11]  }
  0x15   : > { %s170_s8 = sshll.u32 %s3364_s7, 4  ;;  %s3365_s10 = smov [#allocation13]   ;;  %s3489_s8 = int_to_ptr.vmem [resolvable:$true] %s170_s8 }
  0x16   : > { %s4002_s6 = scalar_select %p3485_p8, 1, 0 }
  0x17   : > { %p2988_p9 = pneg %p3485_p8  ;;  %s183_s11 = sshll.u32 %s3365_s10, 4  ;;  %s3500_s11 = int_to_ptr.vmem [resolvable:$true] %s183_s11 }
  0x18   : > { %s4004_s2 = sld [smem:[#allocation21_spill]] }
  0x19   : > { %p3496_p11 = pnand %p2988_p9, %p3465_p1 }
  0x1b   : > { %p3510_p13 = pneg %p3496_p11 }
  0x1e   : > { %s3158_s14 = scalar_lea.hbm %s4004_s2, 2048 }
  0x1f   : > { %p3159_p12 = scmp.ne.s32.totalorder %s4004_s2, %s3158_s14  ;;  %p3165_p5 = scmp.lt.u32.totalorder %s3158_s14, %s4004_s2 }
  0x21   : > { %p3161_p0 = pnand %p3510_p13, %p3159_p12 }
  0x23   : > { %p3162_p3 = pneg %p3161_p0 }
  0x25   : > { %p3167_p7 = pnand %p3165_p5, %p3162_p3 }
  0x27   : > { %3170 = shalt.err (!%p3167_p7)
}
  0x28   : > { %s3171_s0 = scalar_lea.vmem %s3489_s8, 2048  ;;  %p3179_p1 = scmp.lt.s32.totalorder %s3489_s8, %s3489_s8 }
  0x29   : > { %p3172_p9 = scmp.ne.s32.totalorder %s3489_s8, %s3171_s0  ;;  %p3180_p4 = scmp.lt.s32.totalorder %s3171_s0, %s3171_s0 }
  0x2b   : > { %p3174_p10 = pnand %p3172_p9, %p3510_p13  ;;  %p3181_p12 = por %p3180_p4, %p3179_p1 }
  0x2d   : > { %p3175_p6 = pneg %p3174_p10 }
  0x2f   : > { %p3182_p0 = pnand %p3181_p12, %p3175_p6 }
  0x31   : > { %3185 = shalt.err (!%p3182_p0)
}
  0x32   : > { %s3366_s26 = smov 256   ;;  %s3367_s7 = smov 16  }
  0x33   : > { %2991 = dma.hbm_to_vmem [thread:$0]  (!%p3496_p11), %s4004_s2, 2048, %s3489_s8, [#allocation12], %s3366_s26, %s3366_s26, %s3367_s7  }
  0x34   : > { %s3186_s15 = scalar_lea.hbm %s3990_s3, 1024 }
  0x35   : > { %p3187_p1 = scmp.ne.s32.totalorder %s3990_s3, %s3186_s15  ;;  %p3193_p10 = scmp.lt.u32.totalorder %s3186_s15, %s3990_s3 }
  0x37   : > { %p3189_p4 = pnand %p3187_p1, %p3510_p13 }
  0x39   : > { %p3190_p6 = pneg %p3189_p4 }
  0x3b   : > { %p3195_p3 = pnand %p3193_p10, %p3190_p6 }
  0x3d   : > { %3198 = shalt.err (!%p3195_p3)
}
  0x3e   : > { %s3199_s8 = scalar_lea.vmem %s3500_s11, 1024  ;;  %p3207_p12 = scmp.lt.s32.totalorder %s3500_s11, %s3500_s11 }
  0x3f   : > { %p3200_p5 = scmp.ne.s32.totalorder %s3500_s11, %s3199_s8  ;;  %p3208_p0 = scmp.lt.s32.totalorder %s3199_s8, %s3199_s8 }
  0x41   : > { %p3202_p7 = pnand %p3200_p5, %p3510_p13  ;;  %p3209_p1 = por %p3208_p0, %p3207_p12 }
  0x43   : > { %p3203_p9 = pneg %p3202_p7 }
  0x45   : > { %p3210_p4 = pnand %p3209_p1, %p3203_p9 }
  0x47   : > { %3213 = shalt.err (!%p3210_p4)
}
  0x48   : > { %s3368_s26 = smov 128   ;;  %s3369_s7 = smov 8  }
  0x49   : > { %2994 = dma.hbm_to_vmem [thread:$0]  (!%p3496_p11), %s3990_s3, 1024, %s3500_s11, [#allocation12], %s3368_s26, %s3368_s26, %s3369_s7  }
  0x4a   : > { %s3370_s13 = smov [#allocation14]   ;;  %s3214_s18 = scalar_lea.hbm %s3991_s4, 16 }
  0x4b   : > { %s197_s14 = sshll.u32 %s3370_s13, 4  ;;  %p3215_p6 = scmp.ne.s32.totalorder %s3991_s4, %s3214_s18  ;;  %s198_s14 = int_to_ptr.vmem [resolvable:$true] %s197_s14 }
  0x4c   : > { %p3221_p5 = scmp.lt.u32.totalorder %s3214_s18, %s3991_s4 }
  0x4d   : > { %p3217_p10 = pnand %p3215_p6, %p3510_p13 }
  0x4f   : > { %p3218_p3 = pneg %p3217_p10 }
  0x51   : > { %p3223_p7 = pnand %p3221_p5, %p3218_p3 }
  0x53   : > { %3226 = shalt.err (!%p3223_p7)
}
  0x54   : > { %s3227_s11 = scalar_lea.vmem %s198_s14, 16  ;;  %s3234_s10 = scalar_lea.vmem %s198_s14, 32 }
  0x55   : > { %p3228_p9 = scmp.ne.s32.totalorder %s198_s14, %s3227_s11  ;;  %p3235_p1 = scmp.lt.s32.totalorder %s198_s14, %s198_s14 }
  0x56   : > { %p3236_p4 = scmp.lt.s32.totalorder %s3234_s10, %s3227_s11 }
  0x57   : > { %p3230_p12 = pnand %p3228_p9, %p3510_p13 }
  0x58   : > { %p3237_p8 = por %p3236_p4, %p3235_p1 }
  0x59   : > { %p3231_p0 = pneg %p3230_p12 }
  0x5b   : > { %p3238_p2 = pnand %p3237_p8, %p3231_p0 }
  0x5d   : > { %3241 = shalt.err (!%p3238_p2)
}
  0x5e   : > { %2997 = dma.hbm_to_vmem [thread:$0]  (!%p3496_p11), %s3991_s4, 16, %s198_s14, [#allocation15]  }
  0x5f   : > { %s36_s2 = sadd.s32 1, %s3358_s24  ;;  %s43_s17 = sadd.s32 1, %s3350_s22 }
  0x60   : > { %p38_p8 = scmp.ge.s32.totalorder %s36_s2, 2  ;;  %p50_p2 = scmp.ne.s32.totalorder %s3350_s22, %s3346_s21 }
  0x61   : > { %p51_p13 = scmp.eq.s32.totalorder %s3362_s25, 0  ;;  %p4007_p10 = scmp.ne.s32.totalorder %s3999_s28, 0 }
  0x62   : > { %s4025_s2 = smov (%p38_p8, %s36_s2), 0  ;;  %p3009_p11 = scmp.lt.s32.totalorder %s3362_s25, 2 }
  0x63   : > { %p3582_p6 = por %p51_p13, %p50_p2  ;;  %p3588_p3 = por %p4007_p10, %p50_p2 }
  0x64   : > { %s40_s16 = ssub.s32 %s3358_s24, %s4025_s2  ;;  %s208_s14 = sand.u32 1, %s3350_s22  }
  0x65   : > { %p41_p5 = scmp.eq.s32.totalorder %s40_s16, 0  ;;  %s2560_s18 = sshll.u32 %s208_s14, 4 }
  0x66   : > { %s2645_s0 = sshll.u32 %s3358_s24, 8  ;;  %s212_s28 = scalar_lea.vmem [#allocation8], %s2560_s18 }
  0x67   : > { %s3597_s19 = scalar_select %p41_p5, %s3350_s22, %s43_s17  }
  0x68   : > { %s3603_s10 = scalar_lea.hbm %s3988_s1, %s2645_s0  ;;  %s219_s12 = sshll.u32 %s212_s28, 4  ;;  %s3605_s12 = int_to_ptr.vmem [resolvable:$true] %s219_s12 }
  0x69   : > { %p3609_p7 = pnand %p3009_p11, %p3582_p6  ;;  %s3613_s17 = scalar_lea.sflag [#allocation9], %s208_s14 }
  0x6a   : > { %s3242_s16 = scalar_lea.hbm %s3603_s10, 256  ;;  %s3247_s9 = scalar_lea.hbm %s3988_s1, 512 }
  0x6b   : > { %p3243_p9 = scmp.ne.s32.totalorder %s3603_s10, %s3242_s16  ;;  %p3244_p12 = pneg %p3609_p7 }
  0x6c   : > { %p3248_p4 = scmp.lt.u32.totalorder %s3603_s10, %s3988_s1  ;;  %p3249_p8 = scmp.lt.u32.totalorder %s3247_s9, %s3242_s16 }
  0x6d   : > { %p3245_p0 = pnand %p3244_p12, %p3243_p9  ;;  %p3251_p13 = scmp.lt.u32.totalorder %s3242_s16, %s3603_s10 }
  0x6e   : > { %p3250_p2 = por %p3249_p8, %p3248_p4 }
  0x6f   : > { %p3246_p1 = pneg %p3245_p0 }
  0x70   : > { %p3252_p6 = por %p3251_p13, %p3250_p2 }
  0x72   : > { %p3253_p10 = pnand %p3252_p6, %p3246_p1 }
  0x74   : > { %3256 = shalt.err (!%p3253_p10)
}
  0x75   : > { %s3257_s14 = scalar_lea.vmem %s3605_s12, 256  ;;  %s3371_s28 = smov [#allocation8]  }
  0x76   : > { %p3258_p11 = scmp.ne.s32.totalorder %s3605_s12, %s3257_s14  ;;  %s3262_s18 = sshll.u32 %s3371_s28, 4  ;;  %s3263_s18 = int_to_ptr.vmem [resolvable:$false] %s3262_s18 }
  0x77   : > { %s3264_s0 = scalar_lea.vmem %s3263_s18, 512  ;;  %p3265_p0 = scmp.lt.s32.totalorder %s3605_s12, %s3263_s18 }
  0x78   : > { %p3260_p5 = pnand %p3258_p11, %p3244_p12  ;;  %p3266_p4 = scmp.lt.s32.totalorder %s3264_s0, %s3257_s14 }
  0x7a   : > { %p3261_p9 = pneg %p3260_p5  ;;  %p3267_p8 = por %p3266_p4, %p3265_p0 }
  0x7c   : > { %p3268_p2 = pnand %p3267_p8, %p3261_p9 }
  0x7e   : > { %3271 = shalt.err (!%p3268_p2)
}
  0x7f   : > { %3001 = dma.hbm_to_vmem [thread:$0]  (!%p3609_p7), %s3603_s10, 256, %s3605_s12, %s3613_s17, %s3368_s26, %s3368_s26, %s3369_s7  }
  0x80   : > { %p4010_p12 = scmp.ne.s32.totalorder %s4002_s6, 0 }
  0x81   : > { %s3647_s16 = sand.u32 (!%p4010_p12), 1, %s3346_s21   ;;  %p4011_p1 = scmp.ne.s32.totalorder (!%p4010_p12), %s4000_s29, 0 }
  0x82   : > { %231 = sbr.rel (%p4010_p12) target bundleno = 5389 (0x150d), region = 36  ;;  %s2564_s9 = sshll.u32 (!%p4010_p12), %s3647_s16, 4 }
  0x83   : > { %s234_s8 = scalar_lea.sflag (!%p4010_p12), [#allocation9], %s3647_s16  ;;  %s3653_s13 = scalar_lea.vmem (!%p4010_p12), [#allocation8], %s2564_s9 }
  0x89   : > { %3325 = dma.done.wait (%p4011_p1), %s234_s8, 256  }
  0x8a   : > { %3327 = vsyncadd (%p4011_p1), %s234_s8, 4294967040  ;;  %p4012_p7 = scmp.ne.s32.totalorder %s3998_s27, 0 }
  0x8c   : > { %3329 = dma.done.wait (%p4012_p7), [#allocation12], 3072  }
  0x8d   : > { %3331 = vsyncadd (%p4012_p7), [#allocation12], 4294964224 }
  0x8e   : > { %3333 = dma.done.wait (%p4012_p7), [#allocation15], 16  }
  0x8f   : > { %3335 = vsyncadd (%p4012_p7), [#allocation15], 4294967280  ;;  %s3667_s6 = sld [smem:[#allocation7]]  ;;  %v3372_v0 = vmov 0.0   ;;  %v282_v1 = vld [vmem:[#allocation11 + $0x8] sm:$0xff]  ;;  %v284_v2 = vld [vmem:[#allocation11 + $0x18] sm:$0xff] }
  0x90   : > { %368 = vmatprep.mubr.f32.mxu0 %v3372_v0  ;;  %374 = vmatprep.mubr.f32.mxu1 %v3372_v0  ;;  %v281_v3 = vld [vmem:[#allocation11] sm:$0xff]  ;;  %v2852_v4 = vpack.c.bf16 %v284_v2, %v282_v1  ;;  %v283_v5 = vld [vmem:[#allocation11 + $0x10] sm:$0xff]  ;;  %v286_v6 = vld [vmem:[#allocation11 + $0x28] sm:$0xff]  ;;  %vm297_vm0 = vcmask 523264   ;;  %vm381_vm1 = vcmask 64512   ;;  %s3373_s27 = smov 120  }
  0x91   : > { %v288_v7 = vld [vmem:[#allocation11 + $0x38] sm:$0xff]  ;;  %v2854_v8 = vpack.c.bf16 %v283_v5, %v281_v3  ;;  %v285_v10 = vld [vmem:[#allocation11 + $0x20] sm:$0xff]  ;;  %v287_v11 = vld [vmem:[#allocation11 + $0x30] sm:$0xff]  ;;  %s3374_s29 = smov 64   ;;  %s3375_s26 = smov 56  }
  0x92   : > { %v2856_v9 = vpack.c.bf16 %v288_v7, %v286_v6  ;;  %v290_v12 = vld [vmem:[#allocation11 + $0x48] sm:$0xff]  ;;  %2853 = vmatprep.subr.bf16.mxu0 %v2852_v4  ;;  %2964 = vmatprep.subr.bf16.mxu1 %v2852_v4  ;;  %v292_v13 = vld [vmem:[#allocation11 + $0x58] sm:$0xff]  ;;  %v2858_v14 = vpack.c.bf16 %v287_v11, %v285_v10  ;;  %v289_v16 = vld [vmem:[#allocation11 + $0x40] sm:$0xff]  ;;  %s3376_s7 = smov 112   ;;  %s3377_s10 = smov 48  }
  0x93   : > { %2855 = vmatpush1.bf16.msra.mxu0 %v2854_v8  ;;  %2968 = vmatpush1.bf16.msra.mxu1 %v2854_v8  ;;  %v2860_v15 = vpack.c.bf16 %v292_v13, %v290_v12  ;;  %v291_v17 = vld [vmem:[#allocation11 + $0x50] sm:$0xff]  ;;  %v294_v18 = vld [vmem:[#allocation11 + $0x68] sm:$0xff]  ;;  %v296_v19 = vld [vmem:[#allocation11 + $0x78] sm:$0xff]  ;;  %s3378_s12 = smov 104   ;;  %s3379_s17 = smov 40  }
  0x94   : > { %2857 = vmatprep.subr.bf16.mxu0 %v2856_v9  ;;  %2965 = vmatprep.subr.bf16.mxu1 %v2856_v9  ;;  %v2862_v20 = vpack.c.bf16 %v291_v17, %v289_v16  ;;  %v2864_v21 = vpack.c.bf16 %v296_v19, %v294_v18  ;;  %v293_v22 = vld [vmem:[#allocation11 + $0x60] sm:$0xff]  ;;  %v295_v23 = vld [vmem:[#allocation11 + $0x70] sm:$0xff]  ;;  %v280_v26 = vld [vmem:[%s3653_s13 + $0x8] sm:$0xff]  ;;  %s3380_s11 = smov 96   ;;  %s3381_s14 = smov 32  }
  0x95   : > { %v2866_v24 = vpack.c.bf16 %v295_v23, %v293_v22  ;;  %v279_v25 = vld [vmem:[%s3653_s13] sm:$0xff]  ;;  %s3382_s28 = smov 88   ;;  %s3383_s18 = smov 24  }
  0x96   : > { %s3384_s0 = smov 80   ;;  %s3385_s8 = smov 16  }
  0x97   : > { %2859 = vmatpush1.bf16.msra.mxu0 %v2858_v14  ;;  %2969 = vmatpush1.bf16.msra.mxu1 %v2858_v14  ;;  %s3386_s13 = smov 72   ;;  %p2572_p13 = scmp.le.s32.totalorder %s3667_s6, 0 }
  0x98   : > { %2861 = vmatprep.subr.bf16.mxu0 %v2860_v15  ;;  %2966 = vmatprep.subr.bf16.mxu1 %v2860_v15  ;;  %vm3746_vm2 = vmpackc.low (!%p2572_p13), %vm381_vm1, %vm381_vm1  ;;  %v593_v17 = vlaneseq (!%p2572_p13)  ;;  %v595_v19 = vstv (!%p2572_p13), %s3667_s6  ;;  %vm696_vm4 = vcmask (!%p2572_p13), 130048   ;;  %vm1012_vm5 = vcmask (!%p2572_p13), 130112  }
  0x99   : > { %vm1225_vm6 = vcmask (!%p2572_p13), 195712   ;;  %vm1438_vm7 = vcmask (!%p2572_p13), 261312   ;;  %vm1651_vm8 = vcmask (!%p2572_p13), 326912   ;;  %vm1864_vm9 = vcmask (!%p2572_p13), 392512  }
  0x9a   : > { %v594_v18 = vand.u32 (!%p2572_p13), 127, %v593_v17  ;;  %vm2077_vm10 = vcmask (!%p2572_p13), 458112   ;;  %vm2290_vm11 = vcmask (!%p2572_p13), 523712  }
  0x9b   : > { %2863 = vmatpush1.bf16.msra.mxu0 %v2862_v20  ;;  %2970 = vmatpush1.bf16.msra.mxu1 %v2862_v20 }
  0x9c   : > { %2865 = vmatprep.subr.bf16.mxu0 %v2864_v21  ;;  %2967 = vmatprep.subr.bf16.mxu1 %v2864_v21  ;;  %vm3757_vm3 = vcmp.lt.s32.totalorder (!%p2572_p13), %v594_v18, %v595_v19 }
  0x9f   : > { %2867 = vmatpush1.bf16.msra.mxu0 %v2866_v24  ;;  %2971 = vmatpush1.bf16.msra.mxu1 %v2866_v24 }
  0xa2   : > { %2569 = vmatmul.mubr.msk.f32.vlgmr.msra.gmra.mrb[0].mxu0 %vm297_vm0, %v279_v25  ;;  %2570 = vmatmul.mubr.msk.f32.vlgmr.msra.gmra.mrb[0].mxu1 %vm297_vm0, %v280_v26 }
 0x175   : > { %v370_v27 = vpop.f32.mrb[0].mxu0  ;;  %v376_v28 = vpop.f32.mrb[0].mxu1 }
 0x176   : > { %382 = vst.msk [vmem:[#allocation2] sm:$0xff] %vm381_vm1, %v370_v27  ;;  %396 = vrot.lane.b32.xlu1 %v370_v27, %s3373_s27  ;;  %386 = vrot.lane.b32.xlu0 %v370_v27, %s3374_s29  ;;  %v372_v29 = vpop.f32.mrb[1].mxu0  ;;  %383 = vst.msk [vmem:[#allocation2 + $0x8] sm:$0xff] %vm381_vm1, %v376_v28  ;;  %v378_v30 = vpop.f32.mrb[1].mxu1 }
 0x177   : > { %394 = vst.msk [vmem:[#allocation4] sm:$0xff] %vm381_vm1, %v372_v29  ;;  %395 = vst.msk [vmem:[#allocation4 + $0x8] sm:$0xff] %vm381_vm1, %v378_v30 }
 0x17a   : > { %398 = vrot.lane.b32.xlu1 %v376_v28, %s3373_s27  ;;  %388 = vrot.lane.b32.xlu0 %v376_v28, %s3374_s29  ;;  %s3387_s29 = smov 8  }
 0x17d   : > { %v598_v15 = vld [vmem:[#allocation2] sm:$0xff] (!%p2572_p13)  ;;  %v599_v16 = vld [vmem:[#allocation2 + $0x8] sm:$0xff] (!%p2572_p13) }
 0x17e   : > { %407 = vrot.lane.b32.xlu1 %v376_v28, %s3375_s26  ;;  %405 = vrot.lane.b32.xlu0 %v370_v27, %s3375_s26  ;;  %s3389_s26 = smov (!%p2572_p13), 16  }
 0x17f   : > { %2725 = vmatprep.mubr.msk.f32.mxu1 (!%p2572_p13), %vm381_vm1, %v598_v15 }
 0x182   : > { %427 = vrot.lane.b32.xlu1 %v376_v28, %s3376_s7  ;;  %425 = vrot.lane.b32.xlu0 %v370_v27, %s3376_s7 }
 0x186   : > { %436 = vrot.lane.b32.xlu1 %v376_v28, %s3377_s10  ;;  %434 = vrot.lane.b32.xlu0 %v370_v27, %s3377_s10  ;;  %s3391_s10 = smov (!%p2572_p13), 32  }
 0x18a   : > { %454 = vrot.lane.b32.xlu1 %v376_v28, %s3378_s12  ;;  %452 = vrot.lane.b32.xlu0 %v370_v27, %s3378_s12 }
 0x18e   : > { %463 = vrot.lane.b32.xlu1 %v376_v28, %s3379_s17  ;;  %461 = vrot.lane.b32.xlu0 %v370_v27, %s3379_s17  ;;  %s3393_s17 = smov (!%p2572_p13), 48  }
 0x192   : > { %481 = vrot.lane.b32.xlu1 %v376_v28, %s3380_s11  ;;  %479 = vrot.lane.b32.xlu0 %v370_v27, %s3380_s11 }
 0x196   : > { %490 = vrot.lane.b32.xlu1 %v376_v28, %s3381_s14  ;;  %488 = vrot.lane.b32.xlu0 %v370_v27, %s3381_s14 }
 0x19a   : > { %508 = vrot.lane.b32.xlu1 %v376_v28, %s3382_s28  ;;  %506 = vrot.lane.b32.xlu0 %v370_v27, %s3382_s28 }
 0x19e   : > { %517 = vrot.lane.b32.xlu1 %v376_v28, %s3383_s18  ;;  %515 = vrot.lane.b32.xlu0 %v370_v27, %s3383_s18 }
 0x1a2   : > { %535 = vrot.lane.b32.xlu1 %v376_v28, %s3384_s0  ;;  %533 = vrot.lane.b32.xlu0 %v370_v27, %s3384_s0 }
 0x1a6   : > { %544 = vrot.lane.b32.xlu1 %v376_v28, %s3385_s8  ;;  %542 = vrot.lane.b32.xlu0 %v370_v27, %s3385_s8 }
 0x1aa   : > { %562 = vrot.lane.b32.xlu1 %v376_v28, %s3386_s13  ;;  %560 = vrot.lane.b32.xlu0 %v370_v27, %s3386_s13 }
 0x1ae   : > { %571 = vrot.lane.b32.xlu1 %v376_v28, %s3387_s29  ;;  %569 = vrot.lane.b32.xlu0 %v370_v27, %s3387_s29 }
 0x1b2   : > { %418 = vrot.lane.b32.xlu1 %v378_v30, %s3373_s27  ;;  %416 = vrot.lane.b32.xlu0 %v372_v29, %s3373_s27  ;;  %s3741_s27 = scalar_lea.vmem [#allocation16], %s2564_s9  ;;  %s3388_s9 = smov (!%p2572_p13), 8  }
 0x1b6   : > { %445 = vrot.lane.b32.xlu1 %v378_v30, %s3376_s7  ;;  %443 = vrot.lane.b32.xlu0 %v372_v29, %s3376_s7  ;;  %s3390_s7 = smov (!%p2572_p13), 24  }
 0x1ba   : > { %472 = vrot.lane.b32.xlu1 %v378_v30, %s3378_s12  ;;  %470 = vrot.lane.b32.xlu0 %v372_v29, %s3378_s12  ;;  %s3392_s12 = smov (!%p2572_p13), 40  }
 0x1be   : > { %499 = vrot.lane.b32.xlu1 %v378_v30, %s3380_s11  ;;  %497 = vrot.lane.b32.xlu0 %v372_v29, %s3380_s11  ;;  %s3394_s11 = smov (!%p2572_p13), 56  }
 0x1c2   : > { %526 = vrot.lane.b32.xlu1 %v378_v30, %s3382_s28  ;;  %524 = vrot.lane.b32.xlu0 %v372_v29, %s3382_s28 }
 0x1c6   : > { %553 = vrot.lane.b32.xlu1 %v378_v30, %s3384_s0  ;;  %551 = vrot.lane.b32.xlu0 %v372_v29, %s3384_s0 }
 0x1ca   : > { %580 = vrot.lane.b32.xlu1 %v378_v30, %s3386_s13  ;;  %578 = vrot.lane.b32.xlu0 %v372_v29, %s3386_s13 }
 0x1e8   : > { %v397_v31 = vpop.permute.xlu1 %396  ;;  %v387_v32 = vpop.permute.xlu0 %386 }
 0x1e9   : > { %403 = vst.msk [vmem:[#allocation2 + $0x10] sm:$0xff] %vm381_vm1, %v397_v31  ;;  %392 = vst.msk [vmem:[#allocation3] sm:$0xff] %vm381_vm1, %v387_v32 }
 0x1ec   : > { %v399_v33 = vpop.permute.xlu1 %398  ;;  %v389_v34 = vpop.permute.xlu0 %388 }
 0x1ed   : > { %404 = vst.msk [vmem:[#allocation2 + $0x18] sm:$0xff] %vm381_vm1, %v399_v33  ;;  %393 = vst.msk [vmem:[#allocation3 + $0x8] sm:$0xff] %vm381_vm1, %v389_v34 }
 0x1f0   : > { %v408_v35 = vpop.permute.xlu1 %407  ;;  %v406_v36 = vpop.permute.xlu0 %405  ;;  %v600_v11 = vld [vmem:[#allocation3] sm:$0xff] (!%p2572_p13) }
 0x1f1   : > { %413 = vst.msk [vmem:[#allocation3 + $0x18] sm:$0xff] %vm381_vm1, %v408_v35  ;;  %412 = vst.msk [vmem:[#allocation3 + $0x10] sm:$0xff] %vm381_vm1, %v406_v36 }
 0x1f4   : > { %v428_v37 = vpop.permute.xlu1 %427  ;;  %v426_v38 = vpop.permute.xlu0 %425  ;;  %v601_v12 = vld [vmem:[#allocation3 + $0x8] sm:$0xff] (!%p2572_p13) }
 0x1f5   : > { %433 = vst.msk [vmem:[#allocation2 + $0x28] sm:$0xff] %vm381_vm1, %v428_v37  ;;  %432 = vst.msk [vmem:[#allocation2 + $0x20] sm:$0xff] %vm381_vm1, %v426_v38  ;;  %v2868_v14 = vpack.c.bf16 (!%p2572_p13), %v601_v12, %v600_v11  ;;  %v602_v37 = vld [vmem:[#allocation4] sm:$0xff] (!%p2572_p13)  ;;  %v603_v38 = vld [vmem:[#allocation4 + $0x8] sm:$0xff] (!%p2572_p13) }
 0x1f7   : > { %2870 = vmatprep.subr.msk.bf16.mxu1 (!%p2572_p13), %vm3746_vm2, %v2868_v14 }
 0x1f8   : > { %v437_v39 = vpop.permute.xlu1 %436  ;;  %v435_v40 = vpop.permute.xlu0 %434  ;;  %2873 = vmatpush3.bf16.xpose.msk.msra.mxu1 (!%p2572_p13), %vm3746_vm2, %v2868_v14 }
 0x1f9   : > { %442 = vst.msk [vmem:[#allocation3 + $0x28] sm:$0xff] %vm381_vm1, %v437_v39  ;;  %441 = vst.msk [vmem:[#allocation3 + $0x20] sm:$0xff] %vm381_vm1, %v435_v40  ;;  %v2874_v39 = vpack.c.bf16 (!%p2572_p13), %v603_v38, %v602_v37  ;;  %v807_v40 = vld [vmem:[#allocation3 + $0x10] sm:$0xff] (!%p2572_p13) }
 0x1fb   : > { %2875 = vmatprep.subr.bf16.mxu1 (!%p2572_p13), %v2874_v39 }
 0x1fc   : > { %v455_v41 = vpop.permute.xlu1 %454  ;;  %v453_v42 = vpop.permute.xlu0 %452  ;;  %v2587_v18 = vld [vmem:[#allocation2 + $0x20] sm:$0xff] (!%p2572_p13)  ;;  %v2588_v19 = vld [vmem:[#allocation2 + $0x28] sm:$0xff] (!%p2572_p13) }
 0x1fd   : > { %460 = vst.msk [vmem:[#allocation2 + $0x38] sm:$0xff] %vm381_vm1, %v455_v41  ;;  %459 = vst.msk [vmem:[#allocation2 + $0x30] sm:$0xff] %vm381_vm1, %v453_v42  ;;  %v808_v41 = vld [vmem:[#allocation3 + $0x18] sm:$0xff] (!%p2572_p13) }
 0x1fe   : > { %v2878_v42 = vpack.c.bf16 (!%p2572_p13), %v808_v41, %v807_v40 }
 0x1ff   : > { %2726 = vmatmul.mubr.msk.f32.vlgmr.msra.gmra.mrb[0].mxu1 (!%p2572_p13), %vm381_vm1, %v599_v16 }
 0x200   : > { %v464_v43 = vpop.permute.xlu1 %463  ;;  %v462_v44 = vpop.permute.xlu0 %461  ;;  %2877 = vmatpush3.bf16.msra.mxu1 (!%p2572_p13), %v2874_v39 }
 0x201   : > { %469 = vst.msk [vmem:[#allocation3 + $0x38] sm:$0xff] %vm381_vm1, %v464_v43  ;;  %468 = vst.msk [vmem:[#allocation3 + $0x30] sm:$0xff] %vm381_vm1, %v462_v44  ;;  %2880 = vmatprep.subr.msk.bf16.mxu1 (!%p2572_p13), %vm3746_vm2, %v2878_v42 }
 0x204   : > { %v482_v45 = vpop.permute.xlu1 %481  ;;  %v480_v46 = vpop.permute.xlu0 %479 }
 0x205   : > { %487 = vst.msk [vmem:[#allocation2 + $0x48] sm:$0xff] %vm381_vm1, %v482_v45  ;;  %486 = vst.msk [vmem:[#allocation2 + $0x40] sm:$0xff] %vm381_vm1, %v480_v46 }
 0x208   : > { %v491_v47 = vpop.permute.xlu1 %490  ;;  %v489_v48 = vpop.permute.xlu0 %488 }
 0x209   : > { %496 = vst.msk [vmem:[#allocation3 + $0x48] sm:$0xff] %vm381_vm1, %v491_v47  ;;  %495 = vst.msk [vmem:[#allocation3 + $0x40] sm:$0xff] %vm381_vm1, %v489_v48 }
 0x20c   : > { %v509_v49 = vpop.permute.xlu1 %508  ;;  %v507_v50 = vpop.permute.xlu0 %506 }
 0x20d   : > { %514 = vst.msk [vmem:[#allocation2 + $0x58] sm:$0xff] %vm381_vm1, %v509_v49  ;;  %513 = vst.msk [vmem:[#allocation2 + $0x50] sm:$0xff] %vm381_vm1, %v507_v50  ;;  %v2579_v49 = vld [vmem:[#allocation2 + $0x10] sm:$0xff] (!%p2572_p13)  ;;  %v2580_v50 = vld [vmem:[#allocation2 + $0x18] sm:$0xff] (!%p2572_p13) }
 0x210   : > { %v518_v51 = vpop.permute.xlu1 %517  ;;  %v516_v52 = vpop.permute.xlu0 %515 }
 0x211   : > { %523 = vst.msk [vmem:[#allocation3 + $0x58] sm:$0xff] %vm381_vm1, %v518_v51  ;;  %522 = vst.msk [vmem:[#allocation3 + $0x50] sm:$0xff] %vm381_vm1, %v516_v52 }
 0x214   : > { %v536_v53 = vpop.permute.xlu1 %535  ;;  %v534_v54 = vpop.permute.xlu0 %533 }
 0x215   : > { %541 = vst.msk [vmem:[#allocation2 + $0x68] sm:$0xff] %vm381_vm1, %v536_v53  ;;  %540 = vst.msk [vmem:[#allocation2 + $0x60] sm:$0xff] %vm381_vm1, %v534_v54 }
 0x218   : > { %v545_v55 = vpop.permute.xlu1 %544  ;;  %v543_v56 = vpop.permute.xlu0 %542 }
 0x219   : > { %550 = vst.msk [vmem:[#allocation3 + $0x68] sm:$0xff] %vm381_vm1, %v545_v55  ;;  %549 = vst.msk [vmem:[#allocation3 + $0x60] sm:$0xff] %vm381_vm1, %v543_v56 }
 0x21c   : > { %v563_v57 = vpop.permute.xlu1 %562  ;;  %v561_v58 = vpop.permute.xlu0 %560 }
 0x21d   : > { %568 = vst.msk [vmem:[#allocation2 + $0x78] sm:$0xff] %vm381_vm1, %v563_v57  ;;  %567 = vst.msk [vmem:[#allocation2 + $0x70] sm:$0xff] %vm381_vm1, %v561_v58 }
 0x220   : > { %v572_v59 = vpop.permute.xlu1 %571  ;;  %v570_v60 = vpop.permute.xlu0 %569 }
 0x221   : > { %577 = vst.msk [vmem:[#allocation3 + $0x78] sm:$0xff] %vm381_vm1, %v572_v59  ;;  %576 = vst.msk [vmem:[#allocation3 + $0x70] sm:$0xff] %vm381_vm1, %v570_v60 }
 0x224   : > { %v419_v61 = vpop.permute.xlu1 %418  ;;  %v417_v62 = vpop.permute.xlu0 %416 }
 0x225   : > { %424 = vst.msk [vmem:[#allocation4 + $0x18] sm:$0xff] %vm381_vm1, %v419_v61  ;;  %423 = vst.msk [vmem:[#allocation4 + $0x10] sm:$0xff] %vm381_vm1, %v417_v62 }
 0x228   : > { %v446_v63 = vpop.permute.xlu1 %445  ;;  %v444_v0 = vpop.permute.xlu0 %443 }
 0x229   : > { %451 = vst.msk [vmem:[#allocation4 + $0x28] sm:$0xff] %vm381_vm1, %v446_v63  ;;  %450 = vst.msk [vmem:[#allocation4 + $0x20] sm:$0xff] %vm381_vm1, %v444_v0 }
 0x22c   : > { %v473_v1 = vpop.permute.xlu1 %472  ;;  %v471_v2 = vpop.permute.xlu0 %470 }
 0x22d   : > { %478 = vst.msk [vmem:[#allocation4 + $0x38] sm:$0xff] %vm381_vm1, %v473_v1  ;;  %477 = vst.msk [vmem:[#allocation4 + $0x30] sm:$0xff] %vm381_vm1, %v471_v2 }
 0x230   : > { %v500_v3 = vpop.permute.xlu1 %499  ;;  %v498_v4 = vpop.permute.xlu0 %497  ;;  %v1023_v39 = vld [vmem:[#allocation4 + $0x20] sm:$0xff] (!%p2572_p13)  ;;  %v1024_v40 = vld [vmem:[#allocation4 + $0x28] sm:$0xff] (!%p2572_p13) }
 0x231   : > { %505 = vst.msk [vmem:[#allocation4 + $0x48] sm:$0xff] %vm381_vm1, %v500_v3  ;;  %504 = vst.msk [vmem:[#allocation4 + $0x40] sm:$0xff] %vm381_vm1, %v498_v4  ;;  %v2894_v41 = vpack.c.bf16 (!%p2572_p13), %v1024_v40, %v1023_v39 }
 0x234   : > { %v527_v5 = vpop.permute.xlu1 %526  ;;  %v525_v6 = vpop.permute.xlu0 %524 }
 0x235   : > { %532 = vst.msk [vmem:[#allocation4 + $0x58] sm:$0xff] %vm381_vm1, %v527_v5  ;;  %531 = vst.msk [vmem:[#allocation4 + $0x50] sm:$0xff] %vm381_vm1, %v525_v6  ;;  %v810_v5 = vld [vmem:[#allocation4 + $0x10] sm:$0xff] (!%p2572_p13)  ;;  %v811_v6 = vld [vmem:[#allocation4 + $0x18] sm:$0xff] (!%p2572_p13) }
 0x237   : > { %592 = sbr.rel (%p2572_p13) target bundleno = 5355 (0x14eb), region = 60 }
 0x238   : > { %v554_v7 = vpop.permute.xlu1 %553  ;;  %v552_v8 = vpop.permute.xlu0 %551 }
 0x239   : > { %559 = vst.msk [vmem:[#allocation4 + $0x68] sm:$0xff] %vm381_vm1, %v554_v7  ;;  %558 = vst.msk [vmem:[#allocation4 + $0x60] sm:$0xff] %vm381_vm1, %v552_v8  ;;  %v2884_v7 = vpack.c.bf16 (!%p2572_p13), %v811_v6, %v810_v5  ;;  %v1020_v8 = vld [vmem:[#allocation3 + $0x20] sm:$0xff] (!%p2572_p13) }
 0x23b   : > { %2885 = vmatprep.subr.bf16.mxu0 (!%p2572_p13), %v2884_v7 }
 0x23c   : > { %v581_v9 = vpop.permute.xlu1 %580  ;;  %v579_v10 = vpop.permute.xlu0 %578  ;;  %2887 = vmatpush3.bf16.msra.mxu0 (!%p2572_p13), %v2884_v7  ;;  %v1236_v7 = vld [vmem:[#allocation4 + $0x30] sm:$0xff] (!%p2572_p13) }
 0x23d   : > { %586 = vst.msk [vmem:[#allocation4 + $0x78] sm:$0xff] %vm381_vm1, %v581_v9  ;;  %585 = vst.msk [vmem:[#allocation4 + $0x70] sm:$0xff] %vm381_vm1, %v579_v10  ;;  %v1021_v9 = vld [vmem:[#allocation3 + $0x28] sm:$0xff] (!%p2572_p13) }
 0x23e   : > { %v2888_v10 = vpack.c.bf16 %v1021_v9, %v1020_v8  ;;  %v1237_v8 = vld [vmem:[#allocation4 + $0x38] sm:$0xff] }
 0x23f   : > { %v2904_v9 = vpack.c.bf16 %v1237_v8, %v1236_v7 }
 0x240   : > { %2890 = vmatprep.subr.msk.bf16.mxu0 %vm3746_vm2, %v2888_v10 }
 0x2d2   : > { %v2727_v21 = vpop.f32.mrb[0].mxu1 }
 0x2d3   : > { %v683_v22 = vpop.f32.mrb[1].mxu1  ;;  %v695_v25 = vsel %vm3757_vm3, %v2727_v21, -1e+30 }
 0x2d4   : > { %v694_v23 = vsel %vm3757_vm3, %v683_v22, -1e+30  ;;  %v700_v26 = vsel %vm696_vm4, %v695_v25, -inf }
 0x2d5   : > { %v697_v24 = vsel %vm696_vm4, %v694_v23, -inf }
 0x2d6   : > { %698 = vmax.xlane.f32.xlu0 %v697_v24 }
 0x2da   : > { %701 = vmax.xlane.f32.xlu0 %v700_v26 }
 0x363   : > { %v699_v27 = vpop.xlane.xlu0 %698 }
 0x364   : > { %v703_v28 = vsub.f32 %v694_v23, %v699_v27 }
 0x366   : > { %v705_v29 = vmul.f32 1.442695, %v703_v28 }
 0x367   : > { %v702_v30 = vpop.xlane.xlu0 %701 }
 0x368   : > { %3094 = vpow2.f32 %v705_v29  ;;  %v704_v31 = vsub.f32 %v695_v25, %v702_v30 }
 0x36a   : > { %v707_v32 = vmul.f32 1.442695, %v704_v31 }
 0x36c   : > { %3096 = vpow2.f32 %v707_v32 }
 0x372   : > { %v3095_v33 = vpop.eup %3094 }
 0x373   : > { %v709_v34 = vsel %vm696_vm4, %v3095_v33, 0.0 }
 0x374   : > { %710 = vadd.xlane.f32.xlu1 %v709_v34 }
 0x376   : > { %v3097_v35 = vpop.eup %3096 }
 0x377   : > { %v712_v36 = vsel %vm696_vm4, %v3097_v35, 0.0 }
 0x378   : > { %713 = vadd.xlane.f32.xlu1 %v712_v36 }
 0x401   : > { %v711_v43 = vpop.xlane.xlu1 %710 }
 0x402   : > { %3098 = vrcp.f32 %v711_v43  ;;  %v1234_v43 = vld [vmem:[#allocation3 + $0x38] sm:$0xff] }
 0x405   : > { %v714_v44 = vpop.xlane.xlu1 %713 }
 0x406   : > { %3100 = vrcp.f32 %v714_v44 }
 0x40c   : > { %v3099_v45 = vpop.eup %3098 }
 0x40d   : > { %v717_v46 = vmul.f32 %v3099_v45, %v3095_v33 }
 0x40f   : > { %2732 = vmatprep.mubr.msk.f32.mxu1 %vm696_vm4, %v717_v46 }
 0x410   : > { %v3101_v47 = vpop.eup %3100 }
 0x411   : > { %v718_v48 = vmul.f32 %v3101_v47, %v3097_v35 }
 0x413   : > { %2733 = vmatmul.mubr.msk.f32.vlgmr.msra.gmra.mrb[2].mxu1 %vm696_vm4, %v718_v48 }
 0x414   : > { %2883 = vmatpush3.bf16.xpose.msk.msra.mxu1 %vm3746_vm2, %v2878_v42  ;;  %2739 = vmatprep.mubr.msk.f32.mxu1 %vm381_vm1, %v2579_v49  ;;  %v1233_v42 = vld [vmem:[#allocation3 + $0x30] sm:$0xff] }
 0x415   : > { %2895 = vmatprep.subr.bf16.mxu1 %v2894_v41  ;;  %v2898_v44 = vpack.c.bf16 %v1234_v43, %v1233_v42  ;;  %v1449_v43 = vld [vmem:[#allocation4 + $0x40] sm:$0xff] }
 0x41b   : > { %2740 = vmatmul.mubr.msk.f32.vlgmr.msra.gmra.mrb[4].mxu1 %vm381_vm1, %v2580_v50 }
 0x41c   : > { %2897 = vmatpush3.bf16.msra.mxu1 %v2894_v41 }
 0x41d   : > { %2900 = vmatprep.subr.msk.bf16.mxu1 %vm3746_vm2, %v2898_v44 }
 0x4e6   : > { %v2734_v51 = vpop.f32.mrb[2].mxu1 }
 0x4e7   : > { %801 = vst.msk [vmem:[#allocation5 + $0x8] sm:$0xff] %vm381_vm1, %v2734_v51  ;;  %v791_v52 = vpop.f32.mrb[3].mxu1  ;;  %v2595_v51 = vld [vmem:[#allocation2 + $0x30] sm:$0xff] }
 0x4e8   : > { %800 = vst.msk [vmem:[#allocation5] sm:$0xff] %vm381_vm1, %v791_v52  ;;  %v2596_v52 = vld [vmem:[#allocation2 + $0x38] sm:$0xff] }
 0x4ee   : > { %v2741_v53 = vpop.f32.mrb[4].mxu1 }
 0x4ef   : > { %v900_v54 = vsel %vm3757_vm3, %v2741_v53, -1e+30  ;;  %v890_v55 = vpop.f32.mrb[5].mxu1 }
 0x4f0   : > { %v899_v56 = vsel %vm3757_vm3, %v890_v55, -1e+30  ;;  %v904_v57 = vsel %vm696_vm4, %v900_v54, -inf }
 0x4f1   : > { %905 = vmax.xlane.f32.xlu1 %v904_v57  ;;  %v901_v58 = vsel %vm696_vm4, %v899_v56, -inf }
 0x4f2   : > { %902 = vmax.xlane.f32.xlu0 %v901_v58 }
 0x57e   : > { %v906_v59 = vpop.xlane.xlu1 %905 }
 0x57f   : > { %v908_v60 = vsub.f32 %v900_v54, %v906_v59  ;;  %v903_v61 = vpop.xlane.xlu0 %902 }
 0x580   : > { %v907_v62 = vsub.f32 %v899_v56, %v903_v61 }
 0x581   : > { %v911_v63 = vmul.f32 1.442695, %v908_v60 }
 0x582   : > { %v909_v0 = vmul.f32 1.442695, %v907_v62 }
 0x583   : > { %3102 = vpow2.f32 %v911_v63 }
 0x584   : > { %3104 = vpow2.f32 %v909_v0 }
 0x58d   : > { %v3103_v1 = vpop.eup %3102 }
 0x58e   : > { %v3105_v2 = vpop.eup %3104  ;;  %v916_v3 = vsel %vm696_vm4, %v3103_v1, 0.0 }
 0x58f   : > { %917 = vadd.xlane.f32.xlu1 %v916_v3  ;;  %v913_v4 = vsel %vm696_vm4, %v3105_v2, 0.0 }
 0x590   : > { %914 = vadd.xlane.f32.xlu0 %v913_v4 }
 0x61c   : > { %v918_v11 = vpop.xlane.xlu1 %917 }
 0x61d   : > { %3106 = vrcp.f32 %v918_v11  ;;  %v915_v12 = vpop.xlane.xlu0 %914  ;;  %v1447_v11 = vld [vmem:[#allocation3 + $0x48] sm:$0xff] }
 0x61e   : > { %3108 = vrcp.f32 %v915_v12 }
 0x627   : > { %v3107_v14 = vpop.eup %3106 }
 0x628   : > { %v3109_v15 = vpop.eup %3108  ;;  %v922_v17 = vmul.f32 %v3107_v14, %v3103_v1 }
 0x629   : > { %v921_v16 = vmul.f32 %v3109_v15, %v3105_v2 }
 0x62b   : > { %2746 = vmatprep.mubr.msk.f32.mxu0 %vm696_vm4, %v921_v16 }
 0x62c   : > { %2747 = vmatmul.mubr.msk.f32.vlgmr.msra.gmra.mrb[0].mxu0 %vm696_vm4, %v922_v17 }
 0x62d   : > { %2893 = vmatpush3.bf16.xpose.msk.msra.mxu0 %vm3746_vm2, %v2888_v10  ;;  %2753 = vmatprep.mubr.msk.f32.mxu0 %vm381_vm1, %v2587_v18  ;;  %v1446_v10 = vld [vmem:[#allocation3 + $0x40] sm:$0xff] }
 0x62e   : > { %2905 = vmatprep.subr.bf16.mxu0 %v2904_v9  ;;  %v2908_v12 = vpack.c.bf16 %v1447_v11, %v1446_v10 }
 0x634   : > { %2754 = vmatmul.mubr.msk.f32.vlgmr.msra.gmra.mrb[2].mxu0 %vm381_vm1, %v2588_v19 }
 0x635   : > { %2907 = vmatpush3.bf16.msra.mxu0 %v2904_v9 }
 0x636   : > { %2910 = vmatprep.subr.msk.bf16.mxu0 %vm3746_vm2, %v2908_v12 }
 0x6ff   : > { %v3795_v21 = vpop.f32.mrb[0].mxu0 }
 0x700   : > { %v3797_v22 = vpop.f32.mrb[1].mxu0 }
 0x707   : > { %v2755_v23 = vpop.f32.mrb[2].mxu0 }
 0x708   : > { %v1113_v24 = vsel %vm3757_vm3, %v2755_v23, -1e+30  ;;  %v1103_v25 = vpop.f32.mrb[3].mxu0  ;;  %v2603_v23 = vld [vmem:[#allocation2 + $0x40] sm:$0xff] }
 0x709   : > { %v1112_v26 = vsel %vm3757_vm3, %v1103_v25, -1e+30  ;;  %v1117_v27 = vsel %vm696_vm4, %v1113_v24, -inf }
 0x70a   : > { %1118 = vmax.xlane.f32.xlu1 %v1117_v27  ;;  %v1114_v28 = vsel %vm696_vm4, %v1112_v26, -inf }
 0x70b   : > { %1115 = vmax.xlane.f32.xlu0 %v1114_v28 }
 0x797   : > { %v1119_v29 = vpop.xlane.xlu1 %1118 }
 0x798   : > { %v1121_v30 = vsub.f32 %v1113_v24, %v1119_v29  ;;  %v1116_v31 = vpop.xlane.xlu0 %1115  ;;  %v2604_v24 = vld [vmem:[#allocation2 + $0x48] sm:$0xff] }
 0x799   : > { %v1120_v32 = vsub.f32 %v1112_v26, %v1116_v31 }
 0x79a   : > { %v1124_v33 = vmul.f32 1.442695, %v1121_v30 }
 0x79b   : > { %v1122_v34 = vmul.f32 1.442695, %v1120_v32 }
 0x79c   : > { %3110 = vpow2.f32 %v1124_v33 }
 0x79d   : > { %3112 = vpow2.f32 %v1122_v34 }
 0x7a6   : > { %v3111_v35 = vpop.eup %3110 }
 0x7a7   : > { %v3113_v36 = vpop.eup %3112  ;;  %v1129_v37 = vsel %vm696_vm4, %v3111_v35, 0.0 }
 0x7a8   : > { %1130 = vadd.xlane.f32.xlu1 %v1129_v37  ;;  %v1126_v38 = vsel %vm696_vm4, %v3113_v36, 0.0 }
 0x7a9   : > { %1127 = vadd.xlane.f32.xlu0 %v1126_v38 }
 0x835   : > { %v1131_v45 = vpop.xlane.xlu1 %1130 }
 0x836   : > { %3114 = vrcp.f32 %v1131_v45  ;;  %v1128_v46 = vpop.xlane.xlu0 %1127 }
 0x837   : > { %3116 = vrcp.f32 %v1128_v46  ;;  %v1659_v46 = vld [vmem:[#allocation3 + $0x50] sm:$0xff] }
 0x840   : > { %v3115_v47 = vpop.eup %3114 }
 0x841   : > { %v3117_v48 = vpop.eup %3116  ;;  %v1135_v50 = vmul.f32 %v3115_v47, %v3111_v35  ;;  %v1660_v47 = vld [vmem:[#allocation3 + $0x58] sm:$0xff] }
 0x842   : > { %v1134_v49 = vmul.f32 %v3117_v48, %v3113_v36  ;;  %v2918_v48 = vpack.c.bf16 %v1660_v47, %v1659_v46 }
 0x844   : > { %2760 = vmatprep.mubr.msk.f32.mxu1 %vm696_vm4, %v1134_v49 }
 0x845   : > { %2761 = vmatmul.mubr.msk.f32.vlgmr.msra.gmra.mrb[6].mxu1 %vm696_vm4, %v1135_v50 }
 0x846   : > { %2903 = vmatpush3.bf16.xpose.msk.msra.mxu1 %vm3746_vm2, %v2898_v44  ;;  %2767 = vmatprep.mubr.msk.f32.mxu1 %vm381_vm1, %v2595_v51  ;;  %v1450_v44 = vld [vmem:[#allocation4 + $0x48] sm:$0xff] }
 0x847   : > { %v2914_v45 = vpack.c.bf16 %v1450_v44, %v1449_v43 }
 0x849   : > { %2915 = vmatprep.subr.bf16.mxu1 %v2914_v45 }
 0x84d   : > { %2768 = vmatmul.mubr.msk.f32.vlgmr.msra.gmra.mrb[8].mxu1 %vm381_vm1, %v2596_v52 }
 0x84e   : > { %2917 = vmatpush3.bf16.msra.mxu1 %v2914_v45 }
 0x84f   : > { %2920 = vmatprep.subr.msk.bf16.mxu1 %vm3746_vm2, %v2918_v48 }
 0x918   : > { %v3815_v53 = vpop.f32.mrb[6].mxu1 }
 0x919   : > { %v3817_v54 = vpop.f32.mrb[7].mxu1 }
 0x920   : > { %v2769_v55 = vpop.f32.mrb[8].mxu1 }
 0x921   : > { %v1326_v56 = vsel %vm3757_vm3, %v2769_v55, -1e+30  ;;  %v1316_v57 = vpop.f32.mrb[9].mxu1 }
 0x922   : > { %v1325_v58 = vsel %vm3757_vm3, %v1316_v57, -1e+30  ;;  %v1330_v59 = vsel %vm696_vm4, %v1326_v56, -inf  ;;  %v2611_v57 = vld [vmem:[#allocation2 + $0x50] sm:$0xff] }
 0x923   : > { %1331 = vmax.xlane.f32.xlu1 %v1330_v59  ;;  %v1327_v60 = vsel %vm696_vm4, %v1325_v58, -inf }
 0x924   : > { %1328 = vmax.xlane.f32.xlu0 %v1327_v60 }
 0x9b0   : > { %v1332_v61 = vpop.xlane.xlu1 %1331 }
 0x9b1   : > { %v1334_v62 = vsub.f32 %v1326_v56, %v1332_v61  ;;  %v1329_v63 = vpop.xlane.xlu0 %1328 }
 0x9b2   : > { %v1333_v0 = vsub.f32 %v1325_v58, %v1329_v63  ;;  %v2612_v58 = vld [vmem:[#allocation2 + $0x58] sm:$0xff] }
 0x9b3   : > { %v1337_v1 = vmul.f32 1.442695, %v1334_v62 }
 0x9b4   : > { %v1335_v2 = vmul.f32 1.442695, %v1333_v0 }
 0x9b5   : > { %3118 = vpow2.f32 %v1337_v1 }
 0x9b6   : > { %3120 = vpow2.f32 %v1335_v2 }
 0x9bf   : > { %v3119_v3 = vpop.eup %3118 }
 0x9c0   : > { %v3121_v4 = vpop.eup %3120  ;;  %v1342_v5 = vsel %vm696_vm4, %v3119_v3, 0.0 }
 0x9c1   : > { %1343 = vadd.xlane.f32.xlu1 %v1342_v5  ;;  %v1339_v6 = vsel %vm696_vm4, %v3121_v4, 0.0 }
 0x9c2   : > { %1340 = vadd.xlane.f32.xlu0 %v1339_v6 }
 0xa4e   : > { %v1344_v14 = vpop.xlane.xlu1 %1343 }
 0xa4f   : > { %3122 = vrcp.f32 %v1344_v14  ;;  %v1341_v15 = vpop.xlane.xlu0 %1340  ;;  %v1662_v14 = vld [vmem:[#allocation4 + $0x50] sm:$0xff] }
 0xa50   : > { %3124 = vrcp.f32 %v1341_v15  ;;  %v1663_v15 = vld [vmem:[#allocation4 + $0x58] sm:$0xff] }
 0xa59   : > { %v3123_v16 = vpop.eup %3122 }
 0xa5a   : > { %v3125_v17 = vpop.eup %3124  ;;  %v1348_v19 = vmul.f32 %v3123_v16, %v3119_v3  ;;  %v2924_v16 = vpack.c.bf16 %v1663_v15, %v1662_v14 }
 0xa5b   : > { %v1347_v18 = vmul.f32 %v3125_v17, %v3121_v4  ;;  %v1872_v17 = vld [vmem:[#allocation3 + $0x60] sm:$0xff] }
 0xa5d   : > { %2774 = vmatprep.mubr.msk.f32.mxu0 %vm696_vm4, %v1347_v18  ;;  %v1873_v18 = vld [vmem:[#allocation3 + $0x68] sm:$0xff] }
 0xa5e   : > { %2775 = vmatmul.mubr.msk.f32.vlgmr.msra.gmra.mrb[4].mxu0 %vm696_vm4, %v1348_v19  ;;  %v2928_v19 = vpack.c.bf16 %v1873_v18, %v1872_v17 }
 0xa5f   : > { %2913 = vmatpush3.bf16.xpose.msk.msra.mxu0 %vm3746_vm2, %v2908_v12  ;;  %2781 = vmatprep.mubr.msk.f32.mxu0 %vm381_vm1, %v2603_v23 }
 0xa60   : > { %2925 = vmatprep.subr.bf16.mxu0 %v2924_v16 }
 0xa66   : > { %2782 = vmatmul.mubr.msk.f32.vlgmr.msra.gmra.mrb[6].mxu0 %vm381_vm1, %v2604_v24 }
 0xa67   : > { %2927 = vmatpush3.bf16.msra.mxu0 %v2924_v16 }
 0xa68   : > { %2930 = vmatprep.subr.msk.bf16.mxu0 %vm3746_vm2, %v2928_v19 }
 0xb31   : > { %v3835_v25 = vpop.f32.mrb[4].mxu0 }
 0xb32   : > { %v3837_v26 = vpop.f32.mrb[5].mxu0 }
 0xb39   : > { %v2783_v27 = vpop.f32.mrb[6].mxu0 }
 0xb3a   : > { %v1539_v28 = vsel %vm3757_vm3, %v2783_v27, -1e+30  ;;  %v1529_v29 = vpop.f32.mrb[7].mxu0 }
 0xb3b   : > { %v1538_v30 = vsel %vm3757_vm3, %v1529_v29, -1e+30  ;;  %v1543_v31 = vsel %vm696_vm4, %v1539_v28, -inf }
 0xb3c   : > { %1544 = vmax.xlane.f32.xlu1 %v1543_v31  ;;  %v1540_v32 = vsel %vm696_vm4, %v1538_v30, -inf  ;;  %v2619_v31 = vld [vmem:[#allocation2 + $0x60] sm:$0xff] }
 0xb3d   : > { %1541 = vmax.xlane.f32.xlu0 %v1540_v32  ;;  %v2620_v32 = vld [vmem:[#allocation2 + $0x68] sm:$0xff] }
 0xbc9   : > { %v1545_v33 = vpop.xlane.xlu1 %1544 }
 0xbca   : > { %v1547_v34 = vsub.f32 %v1539_v28, %v1545_v33  ;;  %v1542_v35 = vpop.xlane.xlu0 %1541 }
 0xbcb   : > { %v1546_v36 = vsub.f32 %v1538_v30, %v1542_v35 }
 0xbcc   : > { %v1550_v37 = vmul.f32 1.442695, %v1547_v34 }
 0xbcd   : > { %v1548_v38 = vmul.f32 1.442695, %v1546_v36 }
 0xbce   : > { %3126 = vpow2.f32 %v1550_v37 }
 0xbcf   : > { %3128 = vpow2.f32 %v1548_v38 }
 0xbd8   : > { %v3127_v39 = vpop.eup %3126 }
 0xbd9   : > { %v3129_v40 = vpop.eup %3128  ;;  %v1555_v41 = vsel %vm696_vm4, %v3127_v39, 0.0 }
 0xbda   : > { %1556 = vadd.xlane.f32.xlu1 %v1555_v41  ;;  %v1552_v42 = vsel %vm696_vm4, %v3129_v40, 0.0 }
 0xbdb   : > { %1553 = vadd.xlane.f32.xlu0 %v1552_v42 }
 0xc67   : > { %v1557_v49 = vpop.xlane.xlu1 %1556 }
 0xc68   : > { %3130 = vrcp.f32 %v1557_v49  ;;  %v1554_v50 = vpop.xlane.xlu0 %1553 }
 0xc69   : > { %3132 = vrcp.f32 %v1554_v50 }
 0xc72   : > { %v3131_v51 = vpop.eup %3130 }
 0xc73   : > { %v3133_v52 = vpop.eup %3132  ;;  %v1561_v56 = vmul.f32 %v3131_v51, %v3127_v39  ;;  %v1875_v51 = vld [vmem:[#allocation4 + $0x60] sm:$0xff] }
 0xc74   : > { %v1560_v55 = vmul.f32 %v3133_v52, %v3129_v40  ;;  %v1876_v52 = vld [vmem:[#allocation4 + $0x68] sm:$0xff] }
 0xc76   : > { %2788 = vmatprep.mubr.msk.f32.mxu1 %vm696_vm4, %v1560_v55  ;;  %v2934_v55 = vpack.c.bf16 %v1876_v52, %v1875_v51 }
 0xc77   : > { %2789 = vmatmul.mubr.msk.f32.vlgmr.msra.gmra.mrb[10].mxu1 %vm696_vm4, %v1561_v56  ;;  %v2085_v56 = vld [vmem:[#allocation3 + $0x70] sm:$0xff] }
 0xc78   : > { %2923 = vmatpush3.bf16.xpose.msk.msra.mxu1 %vm3746_vm2, %v2918_v48  ;;  %2795 = vmatprep.mubr.msk.f32.mxu1 %vm381_vm1, %v2611_v57  ;;  %v2086_v57 = vld [vmem:[#allocation3 + $0x78] sm:$0xff] }
 0xc79   : > { %2935 = vmatprep.subr.bf16.mxu1 %v2934_v55 }
 0xc7f   : > { %2796 = vmatmul.mubr.msk.f32.vlgmr.msra.gmra.mrb[12].mxu1 %vm381_vm1, %v2612_v58  ;;  %v2938_v58 = vpack.c.bf16 %v2086_v57, %v2085_v56 }
 0xc80   : > { %2937 = vmatpush3.bf16.msra.mxu1 %v2934_v55 }
 0xc81   : > { %2940 = vmatprep.subr.msk.bf16.mxu1 %vm3746_vm2, %v2938_v58 }
 0xd4a   : > { %v3855_v59 = vpop.f32.mrb[10].mxu1 }
 0xd4b   : > { %v3857_v60 = vpop.f32.mrb[11].mxu1 }
 0xd52   : > { %v2797_v61 = vpop.f32.mrb[12].mxu1 }
 0xd53   : > { %v1752_v62 = vsel %vm3757_vm3, %v2797_v61, -1e+30  ;;  %v1742_v63 = vpop.f32.mrb[13].mxu1 }
 0xd54   : > { %v1751_v0 = vsel %vm3757_vm3, %v1742_v63, -1e+30  ;;  %v1756_v1 = vsel %vm696_vm4, %v1752_v62, -inf }
 0xd55   : > { %1757 = vmax.xlane.f32.xlu1 %v1756_v1  ;;  %v1753_v2 = vsel %vm696_vm4, %v1751_v0, -inf }
 0xd56   : > { %1754 = vmax.xlane.f32.xlu0 %v1753_v2 }
 0xde2   : > { %v1758_v3 = vpop.xlane.xlu1 %1757 }
 0xde3   : > { %v1760_v4 = vsub.f32 %v1752_v62, %v1758_v3  ;;  %v1755_v5 = vpop.xlane.xlu0 %1754  ;;  %v2627_v3 = vld [vmem:[#allocation2 + $0x70] sm:$0xff] }
 0xde4   : > { %v1759_v6 = vsub.f32 %v1751_v0, %v1755_v5 }
 0xde5   : > { %v1763_v7 = vmul.f32 1.442695, %v1760_v4  ;;  %v2628_v4 = vld [vmem:[#allocation2 + $0x78] sm:$0xff] }
 0xde6   : > { %v1761_v8 = vmul.f32 1.442695, %v1759_v6 }
 0xde7   : > { %3134 = vpow2.f32 %v1763_v7 }
 0xde8   : > { %3136 = vpow2.f32 %v1761_v8 }
 0xdf1   : > { %v3135_v9 = vpop.eup %3134 }
 0xdf2   : > { %v3137_v10 = vpop.eup %3136  ;;  %v1768_v11 = vsel %vm696_vm4, %v3135_v9, 0.0 }
 0xdf3   : > { %1769 = vadd.xlane.f32.xlu1 %v1768_v11  ;;  %v1765_v12 = vsel %vm696_vm4, %v3137_v10, 0.0 }
 0xdf4   : > { %1766 = vadd.xlane.f32.xlu0 %v1765_v12 }
 0xe80   : > { %v1770_v23 = vpop.xlane.xlu1 %1769 }
 0xe81   : > { %3138 = vrcp.f32 %v1770_v23  ;;  %v1767_v24 = vpop.xlane.xlu0 %1766 }
 0xe82   : > { %3140 = vrcp.f32 %v1767_v24 }
 0xe8b   : > { %v3139_v27 = vpop.eup %3138 }
 0xe8c   : > { %v3141_v28 = vpop.eup %3140  ;;  %v1774_v30 = vmul.f32 %v3139_v27, %v3135_v9  ;;  %v2088_v27 = vld [vmem:[#allocation4 + $0x70] sm:$0xff] }
 0xe8d   : > { %v1773_v29 = vmul.f32 %v3141_v28, %v3137_v10  ;;  %v2089_v28 = vld [vmem:[#allocation4 + $0x78] sm:$0xff] }
 0xe8f   : > { %2802 = vmatprep.mubr.msk.f32.mxu0 %vm696_vm4, %v1773_v29  ;;  %v2944_v29 = vpack.c.bf16 %v2089_v28, %v2088_v27 }
 0xe90   : > { %2803 = vmatmul.mubr.msk.f32.vlgmr.msra.gmra.mrb[8].mxu0 %vm696_vm4, %v1774_v30 }
 0xe91   : > { %2933 = vmatpush3.bf16.xpose.msk.msra.mxu0 %vm3746_vm2, %v2928_v19  ;;  %2809 = vmatprep.mubr.msk.f32.mxu0 %vm381_vm1, %v2619_v31 }
 0xe92   : > { %2945 = vmatprep.subr.bf16.mxu0 %v2944_v29 }
 0xe98   : > { %2810 = vmatmul.mubr.msk.f32.vlgmr.msra.gmra.mrb[10].mxu0 %vm381_vm1, %v2620_v32 }
 0xe99   : > { %2947 = vmatpush3.bf16.msra.mxu0 %v2944_v29 }
 0xf63   : > { %v3875_v33 = vpop.f32.mrb[8].mxu0 }
 0xf64   : > { %v3877_v34 = vpop.f32.mrb[9].mxu0 }
 0xf6b   : > { %v2811_v35 = vpop.f32.mrb[10].mxu0 }
 0xf6c   : > { %v1965_v36 = vsel %vm3757_vm3, %v2811_v35, -1e+30  ;;  %v1955_v37 = vpop.f32.mrb[11].mxu0 }
 0xf6d   : > { %v1964_v38 = vsel %vm3757_vm3, %v1955_v37, -1e+30  ;;  %v1969_v39 = vsel %vm696_vm4, %v1965_v36, -inf }
 0xf6e   : > { %1970 = vmax.xlane.f32.xlu1 %v1969_v39  ;;  %v1966_v40 = vsel %vm696_vm4, %v1964_v38, -inf }
 0xf6f   : > { %1967 = vmax.xlane.f32.xlu0 %v1966_v40  ;;  %v2295_v40 = vld [vmem:[#allocation13] sm:$0xff] }
 0xffb   : > { %v1971_v41 = vpop.xlane.xlu1 %1970 }
 0xffc   : > { %v1973_v42 = vsub.f32 %v1965_v36, %v1971_v41  ;;  %v1968_v43 = vpop.xlane.xlu0 %1967  ;;  %v2296_v41 = vld [vmem:[#allocation13 + $0x8] sm:$0xff] }
 0xffd   : > { %v1972_v44 = vsub.f32 %v1964_v38, %v1968_v43  ;;  %v2948_v43 = vpack.c.bf16 %v2296_v41, %v2295_v40 }
 0xffe   : > { %v1976_v45 = vmul.f32 1.442695, %v1973_v42  ;;  %v2297_v42 = vld [vmem:[#allocation13 + $0x10] sm:$0xff] }
 0xfff   : > { %v1974_v46 = vmul.f32 1.442695, %v1972_v44  ;;  %v2298_v44 = vld [vmem:[#allocation13 + $0x18] sm:$0xff]  ;;  %2949 = vmatprep.subr.bf16.mxu0 %v2948_v43 }
0x1000   : > { %3142 = vpow2.f32 %v1976_v45  ;;  %v2952_v45 = vpack.c.bf16 %v2298_v44, %v2297_v42 }
0x1001   : > { %3144 = vpow2.f32 %v1974_v46  ;;  %v2299_v46 = vld [vmem:[#allocation13 + $0x20] sm:$0xff] }
0x100a   : > { %v3143_v47 = vpop.eup %3142 }
0x100b   : > { %v3145_v48 = vpop.eup %3144  ;;  %v1981_v49 = vsel %vm696_vm4, %v3143_v47, 0.0 }
0x100c   : > { %1982 = vadd.xlane.f32.xlu1 %v1981_v49  ;;  %v1978_v50 = vsel %vm696_vm4, %v3145_v48, 0.0  ;;  %v2301_v49 = vld [vmem:[#allocation13 + $0x30] sm:$0xff] }
0x100d   : > { %1979 = vadd.xlane.f32.xlu0 %v1978_v50  ;;  %v2302_v50 = vld [vmem:[#allocation13 + $0x38] sm:$0xff] }
0x100e   : > { %v2960_v51 = vpack.c.bf16 %v2302_v50, %v2301_v49 }
0x1099   : > { %v1983_v61 = vpop.xlane.xlu1 %1982 }
0x109a   : > { %3146 = vrcp.f32 %v1983_v61  ;;  %v1980_v62 = vpop.xlane.xlu0 %1979 }
0x109b   : > { %3148 = vrcp.f32 %v1980_v62  ;;  %v2635_v62 = vld [vmem:[#allocation14] ss:$0 sm:$0xff] }
0x10a4   : > { %v3147_v63 = vpop.eup %3146 }
0x10a5   : > { %v3149_v0 = vpop.eup %3148  ;;  %v1987_v2 = vmul.f32 %v3147_v63, %v3143_v47  ;;  %v2300_v47 = vld [vmem:[#allocation13 + $0x28] sm:$0xff] }
0x10a6   : > { %v1986_v1 = vmul.f32 %v3149_v0, %v3145_v48  ;;  %v2956_v48 = vpack.c.bf16 %v2300_v47, %v2299_v46 }
0x10a8   : > { %2816 = vmatprep.mubr.msk.f32.mxu1 %vm696_vm4, %v1986_v1 }
0x10a9   : > { %2817 = vmatmul.mubr.msk.f32.vlgmr.msra.gmra.mrb[14].mxu1 %vm696_vm4, %v1987_v2 }
0x10aa   : > { %2943 = vmatpush3.bf16.xpose.msk.msra.mxu1 %vm3746_vm2, %v2938_v58  ;;  %2823 = vmatprep.mubr.msk.f32.mxu1 %vm381_vm1, %v2627_v3 }
0x10b1   : > { %2824 = vmatmul.mubr.msk.f32.vlgmr.msra.gmra.mrb[16].mxu1 %vm381_vm1, %v2628_v4 }
0x117c   : > { %v2818_v5 = vpop.f32.mrb[14].mxu1 }
0x117d   : > { %v2060_v6 = vpop.f32.mrb[15].mxu1 }
0x1184   : > { %v2825_v7 = vpop.f32.mrb[16].mxu1 }
0x1185   : > { %v2178_v8 = vsel %vm3757_vm3, %v2825_v7, -1e+30  ;;  %v2168_v9 = vpop.f32.mrb[17].mxu1 }
0x1186   : > { %v2177_v10 = vsel %vm3757_vm3, %v2168_v9, -1e+30  ;;  %v2182_v11 = vsel %vm696_vm4, %v2178_v8, -inf }
0x1187   : > { %2183 = vmax.xlane.f32.xlu1 %v2182_v11  ;;  %v2179_v13 = vsel %vm696_vm4, %v2177_v10, -inf }
0x1188   : > { %2180 = vmax.xlane.f32.xlu0 %v2179_v13 }
0x1214   : > { %v2184_v12 = vpop.xlane.xlu1 %2183 }
0x1215   : > { %v2186_v14 = vsub.f32 %v2178_v8, %v2184_v12  ;;  %v2181_v15 = vpop.xlane.xlu0 %2180 }
0x1216   : > { %v2185_v16 = vsub.f32 %v2177_v10, %v2181_v15 }
0x1217   : > { %v2189_v17 = vmul.f32 1.442695, %v2186_v14 }
0x1218   : > { %v2187_v18 = vmul.f32 1.442695, %v2185_v16 }
0x1219   : > { %3150 = vpow2.f32 %v2189_v17 }
0x121a   : > { %3152 = vpow2.f32 %v2187_v18 }
0x1223   : > { %v3151_v19 = vpop.eup %3150 }
0x1224   : > { %v3153_v23 = vpop.eup %3152  ;;  %v2194_v24 = vsel %vm696_vm4, %v3151_v19, 0.0 }
0x1225   : > { %2195 = vadd.xlane.f32.xlu1 %v2194_v24  ;;  %v2191_v20 = vsel %vm696_vm4, %v3153_v23, 0.0 }
0x1226   : > { %2192 = vadd.xlane.f32.xlu0 %v2191_v20 }
0x1236   : > { %1008 = vrot.lane.b32.xlu1 %v3795_v21, %s3388_s9 }
0x123a   : > { %1219 = vrot.lane.b32.xlu1 %v3817_v54, %s3389_s26 }
0x123c   : > { %1006 = vrot.lane.b32.xlu0 %v3797_v22, %s3388_s9 }
0x123e   : > { %1221 = vrot.lane.b32.xlu1 %v3815_v53, %s3389_s26 }
0x1240   : > { %1432 = vrot.lane.b32.xlu0 %v3837_v26, %s3390_s7 }
0x1242   : > { %1434 = vrot.lane.b32.xlu1 %v3835_v25, %s3390_s7 }
0x1244   : > { %1645 = vrot.lane.b32.xlu0 %v3857_v60, %s3391_s10 }
0x1246   : > { %1647 = vrot.lane.b32.xlu1 %v3855_v59, %s3391_s10 }
0x1248   : > { %1858 = vrot.lane.b32.xlu0 %v3877_v34, %s3392_s12 }
0x124a   : > { %1860 = vrot.lane.b32.xlu1 %v3875_v33, %s3392_s12 }
0x124c   : > { %2071 = vrot.lane.b32.xlu0 %v2060_v6, %s3393_s17 }
0x124e   : > { %2073 = vrot.lane.b32.xlu1 %v2818_v5, %s3393_s17 }
0x12b2   : > { %v2196_v21 = vpop.xlane.xlu1 %2195 }
0x12b3   : > { %3154 = vrcp.f32 %v2196_v21  ;;  %v2193_v22 = vpop.xlane.xlu0 %2192 }
0x12b4   : > { %3156 = vrcp.f32 %v2193_v22 }
0x12b6   : > { %v1009_v53 = vpop.permute.xlu1 %1008 }
0x12b7   : > { %1014 = vst.msk [vmem:[#allocation5 + $0x8] sm:$0xff] %vm1012_vm5, %v1009_v53  ;;  %v1007_v54 = vpop.permute.xlu0 %1006 }
0x12b8   : > { %1013 = vst.msk [vmem:[#allocation5] sm:$0xff] %vm1012_vm5, %v1007_v54 }
0x12ba   : > { %v1220_v25 = vpop.permute.xlu1 %1219 }
0x12bb   : > { %1226 = vst.msk [vmem:[#allocation5] sm:$0xff] %vm1225_vm6, %v1220_v25  ;;  %v1433_v26 = vpop.permute.xlu0 %1432 }
0x12bc   : > { %1439 = vst.msk [vmem:[#allocation5] sm:$0xff] %vm1438_vm7, %v1433_v26 }
0x12bd   : > { %v3155_v59 = vpop.eup %3154 }
0x12be   : > { %v3157_v60 = vpop.eup %3156  ;;  %v1222_v30 = vpop.permute.xlu1 %1221  ;;  %v2200_v33 = vmul.f32 %v3155_v59, %v3151_v19 }
0x12bf   : > { %1227 = vst.msk [vmem:[#allocation5 + $0x8] sm:$0xff] %vm1225_vm6, %v1222_v30  ;;  %v1646_v31 = vpop.permute.xlu0 %1645  ;;  %v2199_v32 = vmul.f32 %v3157_v60, %v3153_v23 }
0x12c0   : > { %1652 = vst.msk [vmem:[#allocation5] sm:$0xff] %vm1651_vm8, %v1646_v31 }
0x12c1   : > { %2830 = vmatprep.mubr.msk.f32.mxu0 %vm696_vm4, %v2199_v32 }
0x12c2   : > { %v1435_v34 = vpop.permute.xlu1 %1434  ;;  %2831 = vmatmul.mubr.msk.f32.vlgmr.msra.gmra.mrb[12].mxu0 %vm696_vm4, %v2200_v33 }
0x12c3   : > { %1440 = vst.msk [vmem:[#allocation5 + $0x8] sm:$0xff] %vm1438_vm7, %v1435_v34  ;;  %v1859_v35 = vpop.permute.xlu0 %1858  ;;  %2951 = vmatpush3.bf16.msra.mxu0 %v2948_v43 }
0x12c4   : > { %1865 = vst.msk [vmem:[#allocation5] sm:$0xff] %vm1864_vm9, %v1859_v35  ;;  %2953 = vmatprep.subr.bf16.mxu0 %v2952_v45 }
0x12c6   : > { %v1648_v36 = vpop.permute.xlu1 %1647 }
0x12c7   : > { %1653 = vst.msk [vmem:[#allocation5 + $0x8] sm:$0xff] %vm1651_vm8, %v1648_v36  ;;  %v2072_v37 = vpop.permute.xlu0 %2071  ;;  %2955 = vmatpush3.bf16.msra.mxu0 %v2952_v45 }
0x12c8   : > { %2078 = vst.msk [vmem:[#allocation5] sm:$0xff] %vm2077_vm10, %v2072_v37  ;;  %2957 = vmatprep.subr.bf16.mxu0 %v2956_v48 }
0x12ca   : > { %v1861_v38 = vpop.permute.xlu1 %1860 }
0x12cb   : > { %1866 = vst.msk [vmem:[#allocation5 + $0x8] sm:$0xff] %vm1864_vm9, %v1861_v38  ;;  %2959 = vmatpush3.bf16.msra.mxu0 %v2956_v48 }
0x12cc   : > { %2961 = vmatprep.subr.bf16.mxu0 %v2960_v51 }
0x12ce   : > { %v2074_v39 = vpop.permute.xlu1 %2073 }
0x12cf   : > { %2079 = vst.msk [vmem:[#allocation5 + $0x8] sm:$0xff] %vm2077_vm10, %v2074_v39  ;;  %2963 = vmatpush3.bf16.msra.mxu0 %v2960_v51 }
0x1395   : > { %v2832_v52 = vpop.f32.mrb[12].mxu0 }
0x1396   : > { %2286 = vrot.lane.b32.xlu1 %v2832_v52, %s3394_s11  ;;  %v2273_v55 = vpop.f32.mrb[13].mxu0 }
0x1397   : > { %2284 = vrot.lane.b32.xlu0 %v2273_v55, %s3394_s11 }
0x1408   : > { %v2287_v56 = vpop.permute.xlu1 %2286 }
0x1409   : > { %2292 = vst.msk [vmem:[#allocation5 + $0x8] sm:$0xff] %vm2290_vm11, %v2287_v56  ;;  %v2285_v57 = vpop.permute.xlu0 %2284 }
0x140a   : > { %2291 = vst.msk [vmem:[#allocation5] sm:$0xff] %vm2290_vm11, %v2285_v57 }
0x1410   : > { %v2294_v61 = vld [vmem:[#allocation5 + $0x8] sm:$0xff] }
0x1411   : > { %v2293_v58 = vld [vmem:[#allocation5] sm:$0xff] }
0x1412   : > { %2849 = vmatprep.mubr.msk.f32.mxu0 %vm297_vm0, %v2293_v58 }
0x1413   : > { %2850 = vmatmul.mubr.msk.f32.vlgmr.msra.gmra.mrb[14].mxu0 %vm297_vm0, %v2294_v61 }
0x14e6   : > { %v2851_v63 = vpop.f32.mrb[14].mxu0 }
0x14e7   : > { %v2389_v0 = vadd.f32 %v2851_v63, %v2635_v62  ;;  %v2383_v1 = vpop.f32.mrb[15].mxu0 }
0x14e8   : > { %v2384_v2 = vadd.f32 %v2635_v62, %v2383_v1 }
0x14e9   : > { %2393 = vst.msk [vmem:[%s3741_s27 + $0x8] sm:$0xff] %vm297_vm0, %v2389_v0 }
0x14ea   : > { %2392 = vst.msk [vmem:[%s3741_s27] sm:$0xff] %vm297_vm0, %v2384_v2 }
0x14eb PF: > { %p2639_p6 = scmp.gt.s32.totalorder %s3667_s6, 0 }
0x14ec   : > { %v3395_v3 = vmov (!%p2639_p6), 0.0  }
0x14ed   : > { %2397 = sbr.rel (%p2639_p6) target bundleno = 5364 (0x14f4), region = 64  ;;  %2399 = vst.msk [vmem:[%s3741_s27] sm:$0xff] (!%p2639_p6), %vm297_vm0, %v3395_v3  ;;  %2400 = vst.msk [vmem:[%s3741_s27 + $0x8] sm:$0xff] (!%p2639_p6), %vm297_vm0, %v3395_v3 }
0x14f4 PF: > { %s2646_s14 = sshll.u32 %s3354_s23, 8  ;;  %s2417_s6 = sshll.u32 %s3741_s27, 4  ;;  %s3937_s6 = int_to_ptr.vmem [resolvable:$true] %s2417_s6 }
0x14f5   : > { %s3934_s0 = scalar_lea.hbm %s3992_s5, %s2646_s14  ;;  %s2402_s8 = scalar_lea.sflag [#allocation10], %s3647_s16 }
0x14f6   : > { %s3272_s13 = scalar_lea.vmem %s3937_s6, 256  ;;  %s3396_s9 = smov [#allocation16]  }
0x14f7   : > { %p3273_p10 = scmp.ne.s32.totalorder %s3937_s6, %s3272_s13  ;;  %s3276_s26 = sshll.u32 %s3396_s9, 4  ;;  %s3277_s26 = int_to_ptr.vmem [resolvable:$false] %s3276_s26 }
0x14f8   : > { %s3278_s23 = scalar_lea.vmem %s3277_s26, 512  ;;  %p3279_p9 = scmp.lt.s32.totalorder %s3937_s6, %s3277_s26 }
0x14f9   : > { %p3274_p11 = pnand %p3273_p10, %p3588_p3  ;;  %p3280_p0 = scmp.lt.s32.totalorder %s3278_s23, %s3272_s13 }
0x14fb   : > { %p3275_p5 = pneg %p3274_p11  ;;  %p3281_p4 = por %p3280_p0, %p3279_p9 }
0x14fd   : > { %p3282_p8 = pnand %p3281_p4, %p3275_p5 }
0x14ff   : > { %3285 = shalt.err (!%p3282_p8)
}
0x1500   : > { %s3286_s27 = scalar_lea.hbm %s3934_s0, 256  ;;  %s3290_s12 = scalar_lea.hbm %s3992_s5, 512 }
0x1501   : > { %p3287_p2 = scmp.ne.s32.totalorder %s3934_s0, %s3286_s27  ;;  %p3291_p7 = scmp.lt.u32.totalorder %s3934_s0, %s3992_s5 }
0x1502   : > { %p3292_p13 = scmp.lt.u32.totalorder %s3290_s12, %s3286_s27  ;;  %p3294_p10 = scmp.lt.u32.totalorder %s3286_s27, %s3934_s0 }
0x1503   : > { %p3288_p12 = pnand %p3287_p2, %p3588_p3 }
0x1504   : > { %p3293_p6 = por %p3292_p13, %p3291_p7 }
0x1505   : > { %p3289_p1 = pneg %p3288_p12 }
0x1506   : > { %p3295_p11 = por %p3294_p10, %p3293_p6 }
0x1508   : > { %p3296_p5 = pnand %p3295_p11, %p3289_p1 }
0x150a   : > { %3299 = shalt.err (!%p3296_p5)
}
0x150b   : > { %s3397_s14 = smov 128  }
0x150c   : > { %2986 = dma.vmem_to_hbm [thread:$0]  (%p3588_p3), %s3937_s6, 256, %s3934_s0, %s2402_s8, %s3397_s14, %s3397_s14, %s3387_s29  }
0x150d PF: > { %s2432_s28 = sand.u32 1, %s3342_s20   ;;  %p4017_p9 = scmp.ne.s32.totalorder %s4001_s30, 0 }
0x150e   : > { %p4018_p0 = scmp.ge.s32.totalorder %s3362_s25, 2  ;;  %s2433_s18 = scalar_lea.sflag [#allocation10], %s2432_s28 }
0x1510   : > { %p3003_p4 = pnand %p4018_p0, %p4017_p9 }
0x1512   : > { %3337 = dma.done.wait (!%p3003_p4), %s2433_s18, 256  }
0x1513   : > { %3339 = vsyncadd (!%p3003_p4), %s2433_s18, 4294967040  ;;  %s24_s25 = sadd.s32 1, %s3362_s25   ;;  %s4019_s20 = smov %s3346_s21 }
0x1514   : > { %p21_p8 = scmp.ge.s32.totalorder %s24_s25, 4   ;;  %s4020_s21 = smov %s3350_s22 }
0x1515   : > { %s4021_s22 = smov %s3597_s19  ;;  %s4022_s23 = smov %s3358_s24 }
0x1516   : > { %s4023_s24 = smov %s4025_s2  ;;  %23 = sbr.rel (!%p21_p8) target bundleno = 11 (0xb), region = 148 }
0x151d   :  { %2438 = vsyncpa [#allocation9], 1 }
0x151e   :  { %2440 = vsyncpa [#allocation9 + $0x1], 1 }
0x151f   :  { %2441 = vsyncpa [#allocation12], 1 }
0x1520   :  { %2442 = vsyncpa [#allocation15], 1 }
0x1521   :  { %2443 = vsyncpa [#allocation10], 1 }
0x1522   :  { %2445 = vsyncpa [#allocation10 + $0x1], 1 }

</bundles_post_ra>
